<compile_context>
chip_gen: v5e
topology: v5e:2x2
jax: 0.10.0
libtpu: 0.0.40
codegen_flags: <defaults>
</compile_context>

<pallas_src>
import jax
import jax.numpy as jnp
from jax.experimental import pallas as pl
from jax.experimental.pallas import tpu as pltpu


# ----------------------------- config -------------------------------------
B = 2          # batch
L = 8          # sequence length
D_MODEL = 32   # d_model
N_HEADS = 4
D_HEAD = D_MODEL // N_HEADS
D_FF = 4 * D_MODEL
BL = B * L
LN_EPS = 1e-5
SCALE = 1.0 / (D_HEAD ** 0.5)

# MXU operand dtype (accumulation is always f32). bf16 is native on v6e/v7x
# MXU and halves weight bytes on v5e; element-wise math stays f32 everywhere.
MXU_DTYPE = jnp.bfloat16

# Rows of the packed small-parameter slab (one DMA instead of ten tiny ones).
ROW_BQ, ROW_BK, ROW_BV, ROW_BO = 0, 1, 2, 3
ROW_LN1G, ROW_LN1B, ROW_LN2G, ROW_LN2B = 4, 5, 6, 7
ROW_CB2, ROW_CB1 = 8, 9
VEC_ROWS, VEC_LANES = 16, 128
assert D_MODEL <= VEC_LANES and D_FF <= VEC_LANES


# --------------------------- fused encoder-layer kernel ---------------------
def encoder_layer_kernel(x_ref, wq_ref, wk_ref, wv_ref, wo_ref,
                         w1_ref, w2_ref, vec_ref,
                         out_ref, q_ref, k_ref):
    x = x_ref[...].astype(jnp.float32)                  # (BL, D)
    xm = x.astype(MXU_DTYPE)

    vec = vec_ref[...]                                   # (16, 128) packed params
    bq = vec[ROW_BQ:ROW_BQ + 1, :D_MODEL]
    bk = vec[ROW_BK:ROW_BK + 1, :D_MODEL]
    bv = vec[ROW_BV:ROW_BV + 1, :D_MODEL]
    bo = vec[ROW_BO:ROW_BO + 1, :D_MODEL]
    ln1_g = vec[ROW_LN1G:ROW_LN1G + 1, :D_MODEL]
    ln1_b = vec[ROW_LN1B:ROW_LN1B + 1, :D_MODEL]
    ln2_g = vec[ROW_LN2G:ROW_LN2G + 1, :D_MODEL]
    ln2_b = vec[ROW_LN2B:ROW_LN2B + 1, :D_MODEL]
    cb1 = vec[ROW_CB1:ROW_CB1 + 1, :D_FF]
    cb2 = vec[ROW_CB2:ROW_CB2 + 1, :D_MODEL]

    # ----- per-head attention (head-major weights, leading-dim indexed) -----
    q_heads, k_heads = [], []
    new_x = jnp.zeros((BL, D_MODEL), jnp.float32)
    for h in range(N_HEADS):                             # static unroll
        hb = slice(h * D_HEAD, (h + 1) * D_HEAD)
        wq_h = wq_ref[h].astype(MXU_DTYPE)               # (D, Dh)
        wk_h = wk_ref[h].astype(MXU_DTYPE)
        wv_h = wv_ref[h].astype(MXU_DTYPE)
        wo_h = wo_ref[h].astype(MXU_DTYPE)               # (Dh, D)

        qh = jnp.dot(xm, wq_h, preferred_element_type=jnp.float32) + bq[:, hb]
        kh = jnp.dot(xm, wk_h, preferred_element_type=jnp.float32) + bk[:, hb]
        vh = jnp.dot(xm, wv_h, preferred_element_type=jnp.float32) + bv[:, hb]
        q_heads.append(qh)
        k_heads.append(kh)

        o_rows = []
        for b in range(B):                               # static unroll
            rs = slice(b * L, (b + 1) * L)               # sublane slice
            qhb = qh[rs].astype(MXU_DTYPE)               # (L, Dh)
            khb = kh[rs].astype(MXU_DTYPE)
            vhb = vh[rs].astype(MXU_DTYPE)
            s = jax.lax.dot_general(                      # q @ k^T, (L, L)
                qhb, khb, (((1,), (1,)), ((), ())),
                preferred_element_type=jnp.float32) * SCALE
            s = s - jnp.max(s, axis=-1, keepdims=True)
            p = jnp.exp(s)
            p = p / jnp.sum(p, axis=-1, keepdims=True)    # exact (parity)
            o_rows.append(jnp.dot(p.astype(MXU_DTYPE), vhb,
                                  preferred_element_type=jnp.float32))
        o_h = jnp.concatenate(o_rows, axis=0)             # (BL, Dh), in registers
        # accumulate the out-projection per head -> no (L, D) scratch slab
        new_x = new_x + jnp.dot(o_h.astype(MXU_DTYPE), wo_h,
                                preferred_element_type=jnp.float32)

    new_x = new_x + bo
    q_full = jnp.concatenate(q_heads, axis=-1)            # (BL, D), in registers
    k_full = jnp.concatenate(k_heads, axis=-1)

    # ----- x = x + dropout(new_x); dropout = identity in eval mode -----
    xr = x + new_x

    # ----- norm1 (biased variance, matches nn.LayerNorm) -----
    mu = jnp.mean(xr, axis=-1, keepdims=True)
    var = jnp.mean((xr - mu) ** 2, axis=-1, keepdims=True)
    xn = (xr - mu) * jax.lax.rsqrt(var + LN_EPS) * ln1_g + ln1_b

    # ----- conv1 (k=1) -> relu -> conv2 (k=1), per-position matmuls -----
    y = jnp.dot(xn.astype(MXU_DTYPE), w1_ref[...].astype(MXU_DTYPE),
                preferred_element_type=jnp.float32) + cb1
    y = jnp.maximum(y, 0.0)
    y = jnp.dot(y.astype(MXU_DTYPE), w2_ref[...].astype(MXU_DTYPE),
                preferred_element_type=jnp.float32) + cb2

    # ----- norm2(x + y) -----
    z = xn + y
    mu2 = jnp.mean(z, axis=-1, keepdims=True)
    var2 = jnp.mean((z - mu2) ** 2, axis=-1, keepdims=True)
    zn = (z - mu2) * jax.lax.rsqrt(var2 + LN_EPS) * ln2_g + ln2_b

    # ----- three full-array stores (wrapper only reshapes, no slicing) -----
    out_ref[...] = zn.astype(out_ref.dtype)
    q_ref[...] = q_full.astype(q_ref.dtype)
    k_ref[...] = k_full.astype(k_ref.dtype)


def _cost_estimate():
    qkv_flops = 3 * 2 * BL * D_MODEL * D_MODEL
    oproj_flops = 2 * BL * D_MODEL * D_MODEL
    attn_flops = B * N_HEADS * 2 * (2 * L * L * D_HEAD)
    ffn_flops = 2 * (2 * BL * D_MODEL * D_FF)
    transcendentals = B * N_HEADS * L * L + 2 * BL        # exp + rsqrt
    bytes_accessed = (BL * D_MODEL * 4                      # x
                      + 4 * D_MODEL * D_MODEL * 4           # attn weights
                      + 2 * D_MODEL * D_FF * 4              # ffn weights
                      + VEC_ROWS * VEC_LANES * 4            # packed param slab
                      + 3 * BL * D_MODEL * 4)               # three outputs
    return pl.CostEstimate(flops=qkv_flops + oproj_flops + attn_flops + ffn_flops,
                           transcendentals=transcendentals,
                           bytes_accessed=bytes_accessed)


def encoder_layer_pallas(x2d, params):
    def vmem():
        return pl.BlockSpec(memory_space=pltpu.MemorySpace.VMEM)

    out_shape = (jax.ShapeDtypeStruct((BL, D_MODEL), x2d.dtype),
                 jax.ShapeDtypeStruct((BL, D_MODEL), x2d.dtype),
                 jax.ShapeDtypeStruct((BL, D_MODEL), x2d.dtype))
    return pl.pallas_call(
        encoder_layer_kernel,
        out_shape=out_shape,
        in_specs=[vmem() for _ in range(8)],
        out_specs=(vmem(), vmem(), vmem()),
        compiler_params=pltpu.CompilerParams(vmem_limit_bytes=32 * 1024 * 1024),
        cost_estimate=_cost_estimate(),
    )(x2d, params["wq_h"], params["wk_h"], params["wv_h"], params["wo_h"],
      params["w1"], params["w2"], params["vec"])


# ------------------------------ full layer ---------------------------------
@jax.jit
def encoder_layer_forward(x, params):
    x2d = x.reshape(BL, D_MODEL)
    out2d, q2d, k2d = encoder_layer_pallas(x2d, params)
    out = out2d.reshape(B, L, D_MODEL)
    # queries/keys reshaped to (B, L, H, d_head), matching the PyTorch
    # AttentionLayer's .view(B, L, H, -1)  (free reshapes, no slicing copies).
    queries = q2d.reshape(B, L, N_HEADS, D_HEAD)
    keys = k2d.reshape(B, L, N_HEADS, D_HEAD)
    return out, queries, keys


# ------------------------------ parameters ---------------------------------
def make_params(key):
    ks = jax.random.split(key, 12)

    def w(k, shape, scale):
        return jax.random.normal(k, shape, jnp.float32) * scale

    # attention projection weights stored as (in, out)
    wq = w(ks[0], (D_MODEL, D_MODEL), 0.05)
    wk = w(ks[1], (D_MODEL, D_MODEL), 0.05)
    wv = w(ks[2], (D_MODEL, D_MODEL), 0.05)
    wo = w(ks[3], (D_MODEL, D_MODEL), 0.05)
    bq = w(ks[4], (D_MODEL,), 0.01)
    bk = w(ks[5], (D_MODEL,), 0.01)
    bv = w(ks[6], (D_MODEL,), 0.01)
    bo = w(ks[7], (D_MODEL,), 0.01)
    # conv1 / conv2 (kernel_size=1) pre-transposed to (in_channels, out_channels)
    w1 = w(ks[8], (D_MODEL, D_FF), 0.05)
    cb1 = w(ks[9], (D_FF,), 0.01)
    w2 = w(ks[10], (D_FF, D_MODEL), 0.05)
    cb2 = w(ks[11], (D_MODEL,), 0.01)
    # LayerNorm affine params (PyTorch init: gamma=1, beta=0)
    ln1_g = jnp.ones((D_MODEL,), jnp.float32)
    ln1_b = jnp.zeros((D_MODEL,), jnp.float32)
    ln2_g = jnp.ones((D_MODEL,), jnp.float32)
    ln2_b = jnp.zeros((D_MODEL,), jnp.float32)

    # head-major weight layouts: leading head axis -> no lane slicing in-kernel
    wq_h = wq.reshape(D_MODEL, N_HEADS, D_HEAD).transpose(1, 0, 2)   # (H, D, Dh)
    wk_h = wk.reshape(D_MODEL, N_HEADS, D_HEAD).transpose(1, 0, 2)
    wv_h = wv.reshape(D_MODEL, N_HEADS, D_HEAD).transpose(1, 0, 2)
    wo_h = wo.reshape(N_HEADS, D_HEAD, D_MODEL)                       # (H, Dh, D)

    # all small vectors packed into one slab -> one DMA
    vec = jnp.zeros((VEC_ROWS, VEC_LANES), jnp.float32)
    vec = vec.at[ROW_BQ, :D_MODEL].set(bq)
    vec = vec.at[ROW_BK, :D_MODEL].set(bk)
    vec = vec.at[ROW_BV, :D_MODEL].set(bv)
    vec = vec.at[ROW_BO, :D_MODEL].set(bo)
    vec = vec.at[ROW_LN1G, :D_MODEL].set(ln1_g)
    vec = vec.at[ROW_LN1B, :D_MODEL].set(ln1_b)
    vec = vec.at[ROW_LN2G, :D_MODEL].set(ln2_g)
    vec = vec.at[ROW_LN2B, :D_MODEL].set(ln2_b)
    vec = vec.at[ROW_CB2, :D_MODEL].set(cb2)
    vec = vec.at[ROW_CB1, :D_FF].set(cb1)

    return {"wq_h": wq_h, "wk_h": wk_h, "wv_h": wv_h, "wo_h": wo_h,
            "w1": w1, "w2": w2, "vec": vec}


# ------------------------- pure-JAX reference (f32) -------------------------
def reference_forward(x, p):
    vec = p["vec"]
    bq = vec[ROW_BQ, :D_MODEL]
    bk = vec[ROW_BK, :D_MODEL]
    bv = vec[ROW_BV, :D_MODEL]
    bo = vec[ROW_BO, :D_MODEL]
    ln1_g = vec[ROW_LN1G, :D_MODEL]
    ln1_b = vec[ROW_LN1B, :D_MODEL]
    ln2_g = vec[ROW_LN2G, :D_MODEL]
    ln2_b = vec[ROW_LN2B, :D_MODEL]
    cb1 = vec[ROW_CB1, :D_FF]
    cb2 = vec[ROW_CB2, :D_MODEL]
    wq = p["wq_h"].transpose(1, 0, 2).reshape(D_MODEL, D_MODEL)
    wk = p["wk_h"].transpose(1, 0, 2).reshape(D_MODEL, D_MODEL)
    wv = p["wv_h"].transpose(1, 0, 2).reshape(D_MODEL, D_MODEL)
    wo = p["wo_h"].reshape(D_MODEL, D_MODEL)

    q = x @ wq + bq
    k = x @ wk + bk
    v = x @ wv + bv
    qh = q.reshape(B, L, N_HEADS, D_HEAD)
    kh = k.reshape(B, L, N_HEADS, D_HEAD)
    vh = v.reshape(B, L, N_HEADS, D_HEAD)
    s = jnp.einsum("blhd,bmhd->bhlm", qh, kh) * SCALE
    a = jax.nn.softmax(s, axis=-1)
    o = jnp.einsum("bhlm,bmhd->blhd", a, vh).reshape(B, L, D_MODEL)
    new_x = o @ wo + bo
    xr = x + new_x

    def ln(t, g, bta):
        mu = t.mean(-1, keepdims=True)
        var = ((t - mu) ** 2).mean(-1, keepdims=True)
        return (t - mu) / jnp.sqrt(var + LN_EPS) * g + bta

    xn = ln(xr, ln1_g, ln1_b)
    y = jnp.maximum(xn @ p["w1"] + cb1, 0.0)
    y = y @ p["w2"] + cb2
    return ln(xn + y, ln2_g, ln2_b), qh, kh


if __name__ == "__main__":
    key = jax.random.PRNGKey(0)
    k_x, k_p = jax.random.split(key)
    x = jax.random.normal(k_x, (B, L, D_MODEL), jnp.float32)
    params = make_params(k_p)

    out, queries, keys = encoder_layer_forward(x, params)
    jax.block_until_ready((out, queries, keys))

    assert out.shape == (B, L, D_MODEL)
    assert queries.shape == (B, L, N_HEADS, D_HEAD)
    assert keys.shape == (B, L, N_HEADS, D_HEAD)
    assert bool(jnp.all(jnp.isfinite(out)))
    assert bool(jnp.all(jnp.isfinite(queries))) and bool(jnp.all(jnp.isfinite(keys)))

    ref_out, ref_q, ref_k = reference_forward(x, params)
    assert bool(jnp.allclose(out, ref_out, atol=5e-2, rtol=5e-2))
    assert bool(jnp.allclose(queries, ref_q, atol=5e-2, rtol=5e-2))
    assert bool(jnp.allclose(keys, ref_k, atol=5e-2, rtol=5e-2))

    print("KERNEL_OK")
</pallas_src>

<mosaic_0001>
module attributes {stable_mosaic.version = 11 : i64} {
  func.func @encoder_layer_kernel(%arg0: memref<16x32xf32, #tpu.memory_space<vmem>>, %arg1: memref<4x32x8xf32, #tpu.memory_space<vmem>>, %arg2: memref<4x32x8xf32, #tpu.memory_space<vmem>>, %arg3: memref<4x32x8xf32, #tpu.memory_space<vmem>>, %arg4: memref<4x8x32xf32, #tpu.memory_space<vmem>>, %arg5: memref<32x128xf32, #tpu.memory_space<vmem>>, %arg6: memref<128x32xf32, #tpu.memory_space<vmem>>, %arg7: memref<16x128xf32, #tpu.memory_space<vmem>>, %arg8: memref<16x32xf32, #tpu.memory_space<vmem>>, %arg9: memref<16x32xf32, #tpu.memory_space<vmem>>, %arg10: memref<16x32xf32, #tpu.memory_space<vmem>>) attributes {dimension_semantics = [], scalar_prefetch = 0 : i64, scratch_operands = 0 : i64, tpu.core_type = #tpu.core_type<tc>} {
    %c0 = arith.constant 0 : index
    %c0_0 = arith.constant 0 : index
    %0 = vector.load %arg0[%c0, %c0_0] : memref<16x32xf32, #tpu.memory_space<vmem>>, vector<16x32xf32>
    %1 = arith.truncf %0 : vector<16x32xf32> to vector<16x32xbf16>
    %c0_1 = arith.constant 0 : index
    %c0_2 = arith.constant 0 : index
    %2 = vector.load %arg7[%c0_1, %c0_2] : memref<16x128xf32, #tpu.memory_space<vmem>>, vector<16x128xf32>
    %3 = vector.extract_strided_slice %2 {offsets = [0, 0], sizes = [1, 32], strides = [1, 1]} : vector<16x128xf32> to vector<1x32xf32>
    %4 = vector.extract_strided_slice %2 {offsets = [1, 0], sizes = [1, 32], strides = [1, 1]} : vector<16x128xf32> to vector<1x32xf32>
    %5 = vector.extract_strided_slice %2 {offsets = [2, 0], sizes = [1, 32], strides = [1, 1]} : vector<16x128xf32> to vector<1x32xf32>
    %6 = vector.extract_strided_slice %2 {offsets = [3, 0], sizes = [1, 32], strides = [1, 1]} : vector<16x128xf32> to vector<1x32xf32>
    %7 = vector.extract_strided_slice %2 {offsets = [4, 0], sizes = [1, 32], strides = [1, 1]} : vector<16x128xf32> to vector<1x32xf32>
    %8 = vector.extract_strided_slice %2 {offsets = [5, 0], sizes = [1, 32], strides = [1, 1]} : vector<16x128xf32> to vector<1x32xf32>
    %9 = vector.extract_strided_slice %2 {offsets = [6, 0], sizes = [1, 32], strides = [1, 1]} : vector<16x128xf32> to vector<1x32xf32>
    %10 = vector.extract_strided_slice %2 {offsets = [7, 0], sizes = [1, 32], strides = [1, 1]} : vector<16x128xf32> to vector<1x32xf32>
    %11 = vector.extract_strided_slice %2 {offsets = [9, 0], sizes = [1, 128], strides = [1, 1]} : vector<16x128xf32> to vector<1x128xf32>
    %12 = vector.extract_strided_slice %2 {offsets = [8, 0], sizes = [1, 32], strides = [1, 1]} : vector<16x128xf32> to vector<1x32xf32>
    %cst = arith.constant 0.000000e+00 : f32
    %13 = vector.broadcast %cst : f32 to vector<16x32xf32>
    %c0_3 = arith.constant 0 : index
    %c0_4 = arith.constant 0 : index
    %c0_5 = arith.constant 0 : index
    %14 = vector.load %arg1[%c0_3, %c0_4, %c0_5] : memref<4x32x8xf32, #tpu.memory_space<vmem>>, vector<1x32x8xf32>
    %15 = vector.shape_cast %14 : vector<1x32x8xf32> to vector<32x8xf32>
    %16 = arith.truncf %15 : vector<32x8xf32> to vector<32x8xbf16>
    %c0_6 = arith.constant 0 : index
    %c0_7 = arith.constant 0 : index
    %c0_8 = arith.constant 0 : index
    %17 = vector.load %arg2[%c0_6, %c0_7, %c0_8] : memref<4x32x8xf32, #tpu.memory_space<vmem>>, vector<1x32x8xf32>
    %18 = vector.shape_cast %17 : vector<1x32x8xf32> to vector<32x8xf32>
    %19 = arith.truncf %18 : vector<32x8xf32> to vector<32x8xbf16>
    %c0_9 = arith.constant 0 : index
    %c0_10 = arith.constant 0 : index
    %c0_11 = arith.constant 0 : index
    %20 = vector.load %arg3[%c0_9, %c0_10, %c0_11] : memref<4x32x8xf32, #tpu.memory_space<vmem>>, vector<1x32x8xf32>
    %21 = vector.shape_cast %20 : vector<1x32x8xf32> to vector<32x8xf32>
    %22 = arith.truncf %21 : vector<32x8xf32> to vector<32x8xbf16>
    %c0_12 = arith.constant 0 : index
    %c0_13 = arith.constant 0 : index
    %c0_14 = arith.constant 0 : index
    %23 = vector.load %arg4[%c0_12, %c0_13, %c0_14] : memref<4x8x32xf32, #tpu.memory_space<vmem>>, vector<1x8x32xf32>
    %24 = vector.shape_cast %23 : vector<1x8x32xf32> to vector<8x32xf32>
    %25 = arith.truncf %24 : vector<8x32xf32> to vector<8x32xbf16>
    %cst_15 = arith.constant dense<0.000000e+00> : vector<16x8xf32>
    %26 = tpu.matmul %1, %16, %cst_15 {dimension_numbers = #tpu.dot_dimension_numbers<[1], [0], [0], [1], [0, 0, 1, 1], [], []>} : vector<16x32xbf16>, vector<32x8xbf16>, vector<16x8xf32> -> vector<16x8xf32>
    %27 = vector.extract_strided_slice %3 {offsets = [0, 0], sizes = [1, 8], strides = [1, 1]} : vector<1x32xf32> to vector<1x8xf32>
    %28 = vector.broadcast %27 : vector<1x8xf32> to vector<16x8xf32>
    %29 = arith.addf %26, %28 : vector<16x8xf32>
    %cst_16 = arith.constant dense<0.000000e+00> : vector<16x8xf32>
    %30 = tpu.matmul %1, %19, %cst_16 {dimension_numbers = #tpu.dot_dimension_numbers<[1], [0], [0], [1], [0, 0, 1, 1], [], []>} : vector<16x32xbf16>, vector<32x8xbf16>, vector<16x8xf32> -> vector<16x8xf32>
    %31 = vector.extract_strided_slice %4 {offsets = [0, 0], sizes = [1, 8], strides = [1, 1]} : vector<1x32xf32> to vector<1x8xf32>
    %32 = vector.broadcast %31 : vector<1x8xf32> to vector<16x8xf32>
    %33 = arith.addf %30, %32 : vector<16x8xf32>
    %cst_17 = arith.constant dense<0.000000e+00> : vector<16x8xf32>
    %34 = tpu.matmul %1, %22, %cst_17 {dimension_numbers = #tpu.dot_dimension_numbers<[1], [0], [0], [1], [0, 0, 1, 1], [], []>} : vector<16x32xbf16>, vector<32x8xbf16>, vector<16x8xf32> -> vector<16x8xf32>
    %35 = vector.extract_strided_slice %5 {offsets = [0, 0], sizes = [1, 8], strides = [1, 1]} : vector<1x32xf32> to vector<1x8xf32>
    %36 = vector.broadcast %35 : vector<1x8xf32> to vector<16x8xf32>
    %37 = arith.addf %34, %36 : vector<16x8xf32>
    %38 = vector.extract_strided_slice %29 {offsets = [0, 0], sizes = [8, 8], strides = [1, 1]} : vector<16x8xf32> to vector<8x8xf32>
    %39 = arith.truncf %38 : vector<8x8xf32> to vector<8x8xbf16>
    %40 = vector.extract_strided_slice %33 {offsets = [0, 0], sizes = [8, 8], strides = [1, 1]} : vector<16x8xf32> to vector<8x8xf32>
    %41 = arith.truncf %40 : vector<8x8xf32> to vector<8x8xbf16>
    %42 = vector.extract_strided_slice %37 {offsets = [0, 0], sizes = [8, 8], strides = [1, 1]} : vector<16x8xf32> to vector<8x8xf32>
    %43 = arith.truncf %42 : vector<8x8xf32> to vector<8x8xbf16>
    %cst_18 = arith.constant dense<0.000000e+00> : vector<8x8xf32>
    %44 = tpu.matmul %39, %41, %cst_18 {dimension_numbers = #tpu.dot_dimension_numbers<[1], [1], [0], [0], [0, 0, 1, 0], [], []>} : vector<8x8xbf16>, vector<8x8xbf16>, vector<8x8xf32> -> vector<8x8xf32>
    %cst_19 = arith.constant 0.353553385 : f32
    %45 = vector.broadcast %cst_19 : f32 to vector<8x8xf32>
    %46 = arith.mulf %44, %45 : vector<8x8xf32>
    %cst_20 = arith.constant dense<0xFF800000> : vector<8xf32>
    %47 = vector.multi_reduction <maximumf>, %46, %cst_20 [1] : vector<8x8xf32> to vector<8xf32>
    %48 = vector.shape_cast %47 : vector<8xf32> to vector<8x1xf32>
    %49 = vector.broadcast %48 : vector<8x1xf32> to vector<8x8xf32>
    %50 = arith.subf %46, %49 : vector<8x8xf32>
    %51 = math.exp %50 : vector<8x8xf32>
    %cst_21 = arith.constant dense<0.000000e+00> : vector<8xf32>
    %52 = vector.multi_reduction <add>, %51, %cst_21 [1] : vector<8x8xf32> to vector<8xf32>
    %53 = vector.shape_cast %52 : vector<8xf32> to vector<8x1xf32>
    %54 = vector.broadcast %53 : vector<8x1xf32> to vector<8x8xf32>
    %55 = arith.divf %51, %54 : vector<8x8xf32>
    %56 = arith.truncf %55 : vector<8x8xf32> to vector<8x8xbf16>
    %cst_22 = arith.constant dense<0.000000e+00> : vector<8x8xf32>
    %57 = tpu.matmul %56, %43, %cst_22 {dimension_numbers = #tpu.dot_dimension_numbers<[1], [0], [0], [1], [0, 0, 1, 1], [], []>} : vector<8x8xbf16>, vector<8x8xbf16>, vector<8x8xf32> -> vector<8x8xf32>
    %58 = vector.extract_strided_slice %29 {offsets = [8, 0], sizes = [8, 8], strides = [1, 1]} : vector<16x8xf32> to vector<8x8xf32>
    %59 = arith.truncf %58 : vector<8x8xf32> to vector<8x8xbf16>
    %60 = vector.extract_strided_slice %33 {offsets = [8, 0], sizes = [8, 8], strides = [1, 1]} : vector<16x8xf32> to vector<8x8xf32>
    %61 = arith.truncf %60 : vector<8x8xf32> to vector<8x8xbf16>
    %62 = vector.extract_strided_slice %37 {offsets = [8, 0], sizes = [8, 8], strides = [1, 1]} : vector<16x8xf32> to vector<8x8xf32>
    %63 = arith.truncf %62 : vector<8x8xf32> to vector<8x8xbf16>
    %cst_23 = arith.constant dense<0.000000e+00> : vector<8x8xf32>
    %64 = tpu.matmul %59, %61, %cst_23 {dimension_numbers = #tpu.dot_dimension_numbers<[1], [1], [0], [0], [0, 0, 1, 0], [], []>} : vector<8x8xbf16>, vector<8x8xbf16>, vector<8x8xf32> -> vector<8x8xf32>
    %cst_24 = arith.constant 0.353553385 : f32
    %65 = vector.broadcast %cst_24 : f32 to vector<8x8xf32>
    %66 = arith.mulf %64, %65 : vector<8x8xf32>
    %cst_25 = arith.constant dense<0xFF800000> : vector<8xf32>
    %67 = vector.multi_reduction <maximumf>, %66, %cst_25 [1] : vector<8x8xf32> to vector<8xf32>
    %68 = vector.shape_cast %67 : vector<8xf32> to vector<8x1xf32>
    %69 = vector.broadcast %68 : vector<8x1xf32> to vector<8x8xf32>
    %70 = arith.subf %66, %69 : vector<8x8xf32>
    %71 = math.exp %70 : vector<8x8xf32>
    %cst_26 = arith.constant dense<0.000000e+00> : vector<8xf32>
    %72 = vector.multi_reduction <add>, %71, %cst_26 [1] : vector<8x8xf32> to vector<8xf32>
    %73 = vector.shape_cast %72 : vector<8xf32> to vector<8x1xf32>
    %74 = vector.broadcast %73 : vector<8x1xf32> to vector<8x8xf32>
    %75 = arith.divf %71, %74 : vector<8x8xf32>
    %76 = arith.truncf %75 : vector<8x8xf32> to vector<8x8xbf16>
    %cst_27 = arith.constant dense<0.000000e+00> : vector<8x8xf32>
    %77 = tpu.matmul %76, %63, %cst_27 {dimension_numbers = #tpu.dot_dimension_numbers<[1], [0], [0], [1], [0, 0, 1, 1], [], []>} : vector<8x8xbf16>, vector<8x8xbf16>, vector<8x8xf32> -> vector<8x8xf32>
    %78 = tpu.concatenate %57, %77 in 0 : vector<8x8xf32>, vector<8x8xf32> -> vector<16x8xf32>
    %79 = arith.truncf %78 : vector<16x8xf32> to vector<16x8xbf16>
    %cst_28 = arith.constant dense<0.000000e+00> : vector<16x32xf32>
    %80 = tpu.matmul %79, %25, %cst_28 {dimension_numbers = #tpu.dot_dimension_numbers<[1], [0], [0], [1], [0, 0, 1, 1], [], []>} : vector<16x8xbf16>, vector<8x32xbf16>, vector<16x32xf32> -> vector<16x32xf32>
    %81 = arith.addf %13, %80 : vector<16x32xf32>
    %c1 = arith.constant 1 : index
    %c0_29 = arith.constant 0 : index
    %c0_30 = arith.constant 0 : index
    %82 = vector.load %arg1[%c1, %c0_29, %c0_30] : memref<4x32x8xf32, #tpu.memory_space<vmem>>, vector<1x32x8xf32>
    %83 = vector.shape_cast %82 : vector<1x32x8xf32> to vector<32x8xf32>
    %84 = arith.truncf %83 : vector<32x8xf32> to vector<32x8xbf16>
    %c1_31 = arith.constant 1 : index
    %c0_32 = arith.constant 0 : index
    %c0_33 = arith.constant 0 : index
    %85 = vector.load %arg2[%c1_31, %c0_32, %c0_33] : memref<4x32x8xf32, #tpu.memory_space<vmem>>, vector<1x32x8xf32>
    %86 = vector.shape_cast %85 : vector<1x32x8xf32> to vector<32x8xf32>
    %87 = arith.truncf %86 : vector<32x8xf32> to vector<32x8xbf16>
    %c1_34 = arith.constant 1 : index
    %c0_35 = arith.constant 0 : index
    %c0_36 = arith.constant 0 : index
    %88 = vector.load %arg3[%c1_34, %c0_35, %c0_36] : memref<4x32x8xf32, #tpu.memory_space<vmem>>, vector<1x32x8xf32>
    %89 = vector.shape_cast %88 : vector<1x32x8xf32> to vector<32x8xf32>
    %90 = arith.truncf %89 : vector<32x8xf32> to vector<32x8xbf16>
    %c1_37 = arith.constant 1 : index
    %c0_38 = arith.constant 0 : index
    %c0_39 = arith.constant 0 : index
    %91 = vector.load %arg4[%c1_37, %c0_38, %c0_39] : memref<4x8x32xf32, #tpu.memory_space<vmem>>, vector<1x8x32xf32>
    %92 = vector.shape_cast %91 : vector<1x8x32xf32> to vector<8x32xf32>
    %93 = arith.truncf %92 : vector<8x32xf32> to vector<8x32xbf16>
    %cst_40 = arith.constant dense<0.000000e+00> : vector<16x8xf32>
    %94 = tpu.matmul %1, %84, %cst_40 {dimension_numbers = #tpu.dot_dimension_numbers<[1], [0], [0], [1], [0, 0, 1, 1], [], []>} : vector<16x32xbf16>, vector<32x8xbf16>, vector<16x8xf32> -> vector<16x8xf32>
    %95 = vector.extract_strided_slice %3 {offsets = [0, 8], sizes = [1, 8], strides = [1, 1]} : vector<1x32xf32> to vector<1x8xf32>
    %96 = vector.broadcast %95 : vector<1x8xf32> to vector<16x8xf32>
    %97 = arith.addf %94, %96 : vector<16x8xf32>
    %cst_41 = arith.constant dense<0.000000e+00> : vector<16x8xf32>
    %98 = tpu.matmul %1, %87, %cst_41 {dimension_numbers = #tpu.dot_dimension_numbers<[1], [0], [0], [1], [0, 0, 1, 1], [], []>} : vector<16x32xbf16>, vector<32x8xbf16>, vector<16x8xf32> -> vector<16x8xf32>
    %99 = vector.extract_strided_slice %4 {offsets = [0, 8], sizes = [1, 8], strides = [1, 1]} : vector<1x32xf32> to vector<1x8xf32>
    %100 = vector.broadcast %99 : vector<1x8xf32> to vector<16x8xf32>
    %101 = arith.addf %98, %100 : vector<16x8xf32>
    %cst_42 = arith.constant dense<0.000000e+00> : vector<16x8xf32>
    %102 = tpu.matmul %1, %90, %cst_42 {dimension_numbers = #tpu.dot_dimension_numbers<[1], [0], [0], [1], [0, 0, 1, 1], [], []>} : vector<16x32xbf16>, vector<32x8xbf16>, vector<16x8xf32> -> vector<16x8xf32>
    %103 = vector.extract_strided_slice %5 {offsets = [0, 8], sizes = [1, 8], strides = [1, 1]} : vector<1x32xf32> to vector<1x8xf32>
    %104 = vector.broadcast %103 : vector<1x8xf32> to vector<16x8xf32>
    %105 = arith.addf %102, %104 : vector<16x8xf32>
    %106 = vector.extract_strided_slice %97 {offsets = [0, 0], sizes = [8, 8], strides = [1, 1]} : vector<16x8xf32> to vector<8x8xf32>
    %107 = arith.truncf %106 : vector<8x8xf32> to vector<8x8xbf16>
    %108 = vector.extract_strided_slice %101 {offsets = [0, 0], sizes = [8, 8], strides = [1, 1]} : vector<16x8xf32> to vector<8x8xf32>
    %109 = arith.truncf %108 : vector<8x8xf32> to vector<8x8xbf16>
    %110 = vector.extract_strided_slice %105 {offsets = [0, 0], sizes = [8, 8], strides = [1, 1]} : vector<16x8xf32> to vector<8x8xf32>
    %111 = arith.truncf %110 : vector<8x8xf32> to vector<8x8xbf16>
    %cst_43 = arith.constant dense<0.000000e+00> : vector<8x8xf32>
    %112 = tpu.matmul %107, %109, %cst_43 {dimension_numbers = #tpu.dot_dimension_numbers<[1], [1], [0], [0], [0, 0, 1, 0], [], []>} : vector<8x8xbf16>, vector<8x8xbf16>, vector<8x8xf32> -> vector<8x8xf32>
    %cst_44 = arith.constant 0.353553385 : f32
    %113 = vector.broadcast %cst_44 : f32 to vector<8x8xf32>
    %114 = arith.mulf %112, %113 : vector<8x8xf32>
    %cst_45 = arith.constant dense<0xFF800000> : vector<8xf32>
    %115 = vector.multi_reduction <maximumf>, %114, %cst_45 [1] : vector<8x8xf32> to vector<8xf32>
    %116 = vector.shape_cast %115 : vector<8xf32> to vector<8x1xf32>
    %117 = vector.broadcast %116 : vector<8x1xf32> to vector<8x8xf32>
    %118 = arith.subf %114, %117 : vector<8x8xf32>
    %119 = math.exp %118 : vector<8x8xf32>
    %cst_46 = arith.constant dense<0.000000e+00> : vector<8xf32>
    %120 = vector.multi_reduction <add>, %119, %cst_46 [1] : vector<8x8xf32> to vector<8xf32>
    %121 = vector.shape_cast %120 : vector<8xf32> to vector<8x1xf32>
    %122 = vector.broadcast %121 : vector<8x1xf32> to vector<8x8xf32>
    %123 = arith.divf %119, %122 : vector<8x8xf32>
    %124 = arith.truncf %123 : vector<8x8xf32> to vector<8x8xbf16>
    %cst_47 = arith.constant dense<0.000000e+00> : vector<8x8xf32>
    %125 = tpu.matmul %124, %111, %cst_47 {dimension_numbers = #tpu.dot_dimension_numbers<[1], [0], [0], [1], [0, 0, 1, 1], [], []>} : vector<8x8xbf16>, vector<8x8xbf16>, vector<8x8xf32> -> vector<8x8xf32>
    %126 = vector.extract_strided_slice %97 {offsets = [8, 0], sizes = [8, 8], strides = [1, 1]} : vector<16x8xf32> to vector<8x8xf32>
    %127 = arith.truncf %126 : vector<8x8xf32> to vector<8x8xbf16>
    %128 = vector.extract_strided_slice %101 {offsets = [8, 0], sizes = [8, 8], strides = [1, 1]} : vector<16x8xf32> to vector<8x8xf32>
    %129 = arith.truncf %128 : vector<8x8xf32> to vector<8x8xbf16>
    %130 = vector.extract_strided_slice %105 {offsets = [8, 0], sizes = [8, 8], strides = [1, 1]} : vector<16x8xf32> to vector<8x8xf32>
    %131 = arith.truncf %130 : vector<8x8xf32> to vector<8x8xbf16>
    %cst_48 = arith.constant dense<0.000000e+00> : vector<8x8xf32>
    %132 = tpu.matmul %127, %129, %cst_48 {dimension_numbers = #tpu.dot_dimension_numbers<[1], [1], [0], [0], [0, 0, 1, 0], [], []>} : vector<8x8xbf16>, vector<8x8xbf16>, vector<8x8xf32> -> vector<8x8xf32>
    %cst_49 = arith.constant 0.353553385 : f32
    %133 = vector.broadcast %cst_49 : f32 to vector<8x8xf32>
    %134 = arith.mulf %132, %133 : vector<8x8xf32>
    %cst_50 = arith.constant dense<0xFF800000> : vector<8xf32>
    %135 = vector.multi_reduction <maximumf>, %134, %cst_50 [1] : vector<8x8xf32> to vector<8xf32>
    %136 = vector.shape_cast %135 : vector<8xf32> to vector<8x1xf32>
    %137 = vector.broadcast %136 : vector<8x1xf32> to vector<8x8xf32>
    %138 = arith.subf %134, %137 : vector<8x8xf32>
    %139 = math.exp %138 : vector<8x8xf32>
    %cst_51 = arith.constant dense<0.000000e+00> : vector<8xf32>
    %140 = vector.multi_reduction <add>, %139, %cst_51 [1] : vector<8x8xf32> to vector<8xf32>
    %141 = vector.shape_cast %140 : vector<8xf32> to vector<8x1xf32>
    %142 = vector.broadcast %141 : vector<8x1xf32> to vector<8x8xf32>
    %143 = arith.divf %139, %142 : vector<8x8xf32>
    %144 = arith.truncf %143 : vector<8x8xf32> to vector<8x8xbf16>
    %cst_52 = arith.constant dense<0.000000e+00> : vector<8x8xf32>
    %145 = tpu.matmul %144, %131, %cst_52 {dimension_numbers = #tpu.dot_dimension_numbers<[1], [0], [0], [1], [0, 0, 1, 1], [], []>} : vector<8x8xbf16>, vector<8x8xbf16>, vector<8x8xf32> -> vector<8x8xf32>
    %146 = tpu.concatenate %125, %145 in 0 : vector<8x8xf32>, vector<8x8xf32> -> vector<16x8xf32>
    %147 = arith.truncf %146 : vector<16x8xf32> to vector<16x8xbf16>
    %cst_53 = arith.constant dense<0.000000e+00> : vector<16x32xf32>
    %148 = tpu.matmul %147, %93, %cst_53 {dimension_numbers = #tpu.dot_dimension_numbers<[1], [0], [0], [1], [0, 0, 1, 1], [], []>} : vector<16x8xbf16>, vector<8x32xbf16>, vector<16x32xf32> -> vector<16x32xf32>
    %149 = arith.addf %81, %148 : vector<16x32xf32>
    %c2 = arith.constant 2 : index
    %c0_54 = arith.constant 0 : index
    %c0_55 = arith.constant 0 : index
    %150 = vector.load %arg1[%c2, %c0_54, %c0_55] : memref<4x32x8xf32, #tpu.memory_space<vmem>>, vector<1x32x8xf32>
    %151 = vector.shape_cast %150 : vector<1x32x8xf32> to vector<32x8xf32>
    %152 = arith.truncf %151 : vector<32x8xf32> to vector<32x8xbf16>
    %c2_56 = arith.constant 2 : index
    %c0_57 = arith.constant 0 : index
    %c0_58 = arith.constant 0 : index
    %153 = vector.load %arg2[%c2_56, %c0_57, %c0_58] : memref<4x32x8xf32, #tpu.memory_space<vmem>>, vector<1x32x8xf32>
    %154 = vector.shape_cast %153 : vector<1x32x8xf32> to vector<32x8xf32>
    %155 = arith.truncf %154 : vector<32x8xf32> to vector<32x8xbf16>
    %c2_59 = arith.constant 2 : index
    %c0_60 = arith.constant 0 : index
    %c0_61 = arith.constant 0 : index
    %156 = vector.load %arg3[%c2_59, %c0_60, %c0_61] : memref<4x32x8xf32, #tpu.memory_space<vmem>>, vector<1x32x8xf32>
    %157 = vector.shape_cast %156 : vector<1x32x8xf32> to vector<32x8xf32>
    %158 = arith.truncf %157 : vector<32x8xf32> to vector<32x8xbf16>
    %c2_62 = arith.constant 2 : index
    %c0_63 = arith.constant 0 : index
    %c0_64 = arith.constant 0 : index
    %159 = vector.load %arg4[%c2_62, %c0_63, %c0_64] : memref<4x8x32xf32, #tpu.memory_space<vmem>>, vector<1x8x32xf32>
    %160 = vector.shape_cast %159 : vector<1x8x32xf32> to vector<8x32xf32>
    %161 = arith.truncf %160 : vector<8x32xf32> to vector<8x32xbf16>
    %cst_65 = arith.constant dense<0.000000e+00> : vector<16x8xf32>
    %162 = tpu.matmul %1, %152, %cst_65 {dimension_numbers = #tpu.dot_dimension_numbers<[1], [0], [0], [1], [0, 0, 1, 1], [], []>} : vector<16x32xbf16>, vector<32x8xbf16>, vector<16x8xf32> -> vector<16x8xf32>
    %163 = vector.extract_strided_slice %3 {offsets = [0, 16], sizes = [1, 8], strides = [1, 1]} : vector<1x32xf32> to vector<1x8xf32>
    %164 = vector.broadcast %163 : vector<1x8xf32> to vector<16x8xf32>
    %165 = arith.addf %162, %164 : vector<16x8xf32>
    %cst_66 = arith.constant dense<0.000000e+00> : vector<16x8xf32>
    %166 = tpu.matmul %1, %155, %cst_66 {dimension_numbers = #tpu.dot_dimension_numbers<[1], [0], [0], [1], [0, 0, 1, 1], [], []>} : vector<16x32xbf16>, vector<32x8xbf16>, vector<16x8xf32> -> vector<16x8xf32>
    %167 = vector.extract_strided_slice %4 {offsets = [0, 16], sizes = [1, 8], strides = [1, 1]} : vector<1x32xf32> to vector<1x8xf32>
    %168 = vector.broadcast %167 : vector<1x8xf32> to vector<16x8xf32>
    %169 = arith.addf %166, %168 : vector<16x8xf32>
    %cst_67 = arith.constant dense<0.000000e+00> : vector<16x8xf32>
    %170 = tpu.matmul %1, %158, %cst_67 {dimension_numbers = #tpu.dot_dimension_numbers<[1], [0], [0], [1], [0, 0, 1, 1], [], []>} : vector<16x32xbf16>, vector<32x8xbf16>, vector<16x8xf32> -> vector<16x8xf32>
    %171 = vector.extract_strided_slice %5 {offsets = [0, 16], sizes = [1, 8], strides = [1, 1]} : vector<1x32xf32> to vector<1x8xf32>
    %172 = vector.broadcast %171 : vector<1x8xf32> to vector<16x8xf32>
    %173 = arith.addf %170, %172 : vector<16x8xf32>
    %174 = vector.extract_strided_slice %165 {offsets = [0, 0], sizes = [8, 8], strides = [1, 1]} : vector<16x8xf32> to vector<8x8xf32>
    %175 = arith.truncf %174 : vector<8x8xf32> to vector<8x8xbf16>
    %176 = vector.extract_strided_slice %169 {offsets = [0, 0], sizes = [8, 8], strides = [1, 1]} : vector<16x8xf32> to vector<8x8xf32>
    %177 = arith.truncf %176 : vector<8x8xf32> to vector<8x8xbf16>
    %178 = vector.extract_strided_slice %173 {offsets = [0, 0], sizes = [8, 8], strides = [1, 1]} : vector<16x8xf32> to vector<8x8xf32>
    %179 = arith.truncf %178 : vector<8x8xf32> to vector<8x8xbf16>
    %cst_68 = arith.constant dense<0.000000e+00> : vector<8x8xf32>
    %180 = tpu.matmul %175, %177, %cst_68 {dimension_numbers = #tpu.dot_dimension_numbers<[1], [1], [0], [0], [0, 0, 1, 0], [], []>} : vector<8x8xbf16>, vector<8x8xbf16>, vector<8x8xf32> -> vector<8x8xf32>
    %cst_69 = arith.constant 0.353553385 : f32
    %181 = vector.broadcast %cst_69 : f32 to vector<8x8xf32>
    %182 = arith.mulf %180, %181 : vector<8x8xf32>
    %cst_70 = arith.constant dense<0xFF800000> : vector<8xf32>
    %183 = vector.multi_reduction <maximumf>, %182, %cst_70 [1] : vector<8x8xf32> to vector<8xf32>
    %184 = vector.shape_cast %183 : vector<8xf32> to vector<8x1xf32>
    %185 = vector.broadcast %184 : vector<8x1xf32> to vector<8x8xf32>
    %186 = arith.subf %182, %185 : vector<8x8xf32>
    %187 = math.exp %186 : vector<8x8xf32>
    %cst_71 = arith.constant dense<0.000000e+00> : vector<8xf32>
    %188 = vector.multi_reduction <add>, %187, %cst_71 [1] : vector<8x8xf32> to vector<8xf32>
    %189 = vector.shape_cast %188 : vector<8xf32> to vector<8x1xf32>
    %190 = vector.broadcast %189 : vector<8x1xf32> to vector<8x8xf32>
    %191 = arith.divf %187, %190 : vector<8x8xf32>
    %192 = arith.truncf %191 : vector<8x8xf32> to vector<8x8xbf16>
    %cst_72 = arith.constant dense<0.000000e+00> : vector<8x8xf32>
    %193 = tpu.matmul %192, %179, %cst_72 {dimension_numbers = #tpu.dot_dimension_numbers<[1], [0], [0], [1], [0, 0, 1, 1], [], []>} : vector<8x8xbf16>, vector<8x8xbf16>, vector<8x8xf32> -> vector<8x8xf32>
    %194 = vector.extract_strided_slice %165 {offsets = [8, 0], sizes = [8, 8], strides = [1, 1]} : vector<16x8xf32> to vector<8x8xf32>
    %195 = arith.truncf %194 : vector<8x8xf32> to vector<8x8xbf16>
    %196 = vector.extract_strided_slice %169 {offsets = [8, 0], sizes = [8, 8], strides = [1, 1]} : vector<16x8xf32> to vector<8x8xf32>
    %197 = arith.truncf %196 : vector<8x8xf32> to vector<8x8xbf16>
    %198 = vector.extract_strided_slice %173 {offsets = [8, 0], sizes = [8, 8], strides = [1, 1]} : vector<16x8xf32> to vector<8x8xf32>
    %199 = arith.truncf %198 : vector<8x8xf32> to vector<8x8xbf16>
    %cst_73 = arith.constant dense<0.000000e+00> : vector<8x8xf32>
    %200 = tpu.matmul %195, %197, %cst_73 {dimension_numbers = #tpu.dot_dimension_numbers<[1], [1], [0], [0], [0, 0, 1, 0], [], []>} : vector<8x8xbf16>, vector<8x8xbf16>, vector<8x8xf32> -> vector<8x8xf32>
    %cst_74 = arith.constant 0.353553385 : f32
    %201 = vector.broadcast %cst_74 : f32 to vector<8x8xf32>
    %202 = arith.mulf %200, %201 : vector<8x8xf32>
    %cst_75 = arith.constant dense<0xFF800000> : vector<8xf32>
    %203 = vector.multi_reduction <maximumf>, %202, %cst_75 [1] : vector<8x8xf32> to vector<8xf32>
    %204 = vector.shape_cast %203 : vector<8xf32> to vector<8x1xf32>
    %205 = vector.broadcast %204 : vector<8x1xf32> to vector<8x8xf32>
    %206 = arith.subf %202, %205 : vector<8x8xf32>
    %207 = math.exp %206 : vector<8x8xf32>
    %cst_76 = arith.constant dense<0.000000e+00> : vector<8xf32>
    %208 = vector.multi_reduction <add>, %207, %cst_76 [1] : vector<8x8xf32> to vector<8xf32>
    %209 = vector.shape_cast %208 : vector<8xf32> to vector<8x1xf32>
    %210 = vector.broadcast %209 : vector<8x1xf32> to vector<8x8xf32>
    %211 = arith.divf %207, %210 : vector<8x8xf32>
    %212 = arith.truncf %211 : vector<8x8xf32> to vector<8x8xbf16>
    %cst_77 = arith.constant dense<0.000000e+00> : vector<8x8xf32>
    %213 = tpu.matmul %212, %199, %cst_77 {dimension_numbers = #tpu.dot_dimension_numbers<[1], [0], [0], [1], [0, 0, 1, 1], [], []>} : vector<8x8xbf16>, vector<8x8xbf16>, vector<8x8xf32> -> vector<8x8xf32>
    %214 = tpu.concatenate %193, %213 in 0 : vector<8x8xf32>, vector<8x8xf32> -> vector<16x8xf32>
    %215 = arith.truncf %214 : vector<16x8xf32> to vector<16x8xbf16>
    %cst_78 = arith.constant dense<0.000000e+00> : vector<16x32xf32>
    %216 = tpu.matmul %215, %161, %cst_78 {dimension_numbers = #tpu.dot_dimension_numbers<[1], [0], [0], [1], [0, 0, 1, 1], [], []>} : vector<16x8xbf16>, vector<8x32xbf16>, vector<16x32xf32> -> vector<16x32xf32>
    %217 = arith.addf %149, %216 : vector<16x32xf32>
    %c3 = arith.constant 3 : index
    %c0_79 = arith.constant 0 : index
    %c0_80 = arith.constant 0 : index
    %218 = vector.load %arg1[%c3, %c0_79, %c0_80] : memref<4x32x8xf32, #tpu.memory_space<vmem>>, vector<1x32x8xf32>
    %219 = vector.shape_cast %218 : vector<1x32x8xf32> to vector<32x8xf32>
    %220 = arith.truncf %219 : vector<32x8xf32> to vector<32x8xbf16>
    %c3_81 = arith.constant 3 : index
    %c0_82 = arith.constant 0 : index
    %c0_83 = arith.constant 0 : index
    %221 = vector.load %arg2[%c3_81, %c0_82, %c0_83] : memref<4x32x8xf32, #tpu.memory_space<vmem>>, vector<1x32x8xf32>
    %222 = vector.shape_cast %221 : vector<1x32x8xf32> to vector<32x8xf32>
    %223 = arith.truncf %222 : vector<32x8xf32> to vector<32x8xbf16>
    %c3_84 = arith.constant 3 : index
    %c0_85 = arith.constant 0 : index
    %c0_86 = arith.constant 0 : index
    %224 = vector.load %arg3[%c3_84, %c0_85, %c0_86] : memref<4x32x8xf32, #tpu.memory_space<vmem>>, vector<1x32x8xf32>
    %225 = vector.shape_cast %224 : vector<1x32x8xf32> to vector<32x8xf32>
    %226 = arith.truncf %225 : vector<32x8xf32> to vector<32x8xbf16>
    %c3_87 = arith.constant 3 : index
    %c0_88 = arith.constant 0 : index
    %c0_89 = arith.constant 0 : index
    %227 = vector.load %arg4[%c3_87, %c0_88, %c0_89] : memref<4x8x32xf32, #tpu.memory_space<vmem>>, vector<1x8x32xf32>
    %228 = vector.shape_cast %227 : vector<1x8x32xf32> to vector<8x32xf32>
    %229 = arith.truncf %228 : vector<8x32xf32> to vector<8x32xbf16>
    %cst_90 = arith.constant dense<0.000000e+00> : vector<16x8xf32>
    %230 = tpu.matmul %1, %220, %cst_90 {dimension_numbers = #tpu.dot_dimension_numbers<[1], [0], [0], [1], [0, 0, 1, 1], [], []>} : vector<16x32xbf16>, vector<32x8xbf16>, vector<16x8xf32> -> vector<16x8xf32>
    %231 = vector.extract_strided_slice %3 {offsets = [0, 24], sizes = [1, 8], strides = [1, 1]} : vector<1x32xf32> to vector<1x8xf32>
    %232 = vector.broadcast %231 : vector<1x8xf32> to vector<16x8xf32>
    %233 = arith.addf %230, %232 : vector<16x8xf32>
    %cst_91 = arith.constant dense<0.000000e+00> : vector<16x8xf32>
    %234 = tpu.matmul %1, %223, %cst_91 {dimension_numbers = #tpu.dot_dimension_numbers<[1], [0], [0], [1], [0, 0, 1, 1], [], []>} : vector<16x32xbf16>, vector<32x8xbf16>, vector<16x8xf32> -> vector<16x8xf32>
    %235 = vector.extract_strided_slice %4 {offsets = [0, 24], sizes = [1, 8], strides = [1, 1]} : vector<1x32xf32> to vector<1x8xf32>
    %236 = vector.broadcast %235 : vector<1x8xf32> to vector<16x8xf32>
    %237 = arith.addf %234, %236 : vector<16x8xf32>
    %cst_92 = arith.constant dense<0.000000e+00> : vector<16x8xf32>
    %238 = tpu.matmul %1, %226, %cst_92 {dimension_numbers = #tpu.dot_dimension_numbers<[1], [0], [0], [1], [0, 0, 1, 1], [], []>} : vector<16x32xbf16>, vector<32x8xbf16>, vector<16x8xf32> -> vector<16x8xf32>
    %239 = vector.extract_strided_slice %5 {offsets = [0, 24], sizes = [1, 8], strides = [1, 1]} : vector<1x32xf32> to vector<1x8xf32>
    %240 = vector.broadcast %239 : vector<1x8xf32> to vector<16x8xf32>
    %241 = arith.addf %238, %240 : vector<16x8xf32>
    %242 = vector.extract_strided_slice %233 {offsets = [0, 0], sizes = [8, 8], strides = [1, 1]} : vector<16x8xf32> to vector<8x8xf32>
    %243 = arith.truncf %242 : vector<8x8xf32> to vector<8x8xbf16>
    %244 = vector.extract_strided_slice %237 {offsets = [0, 0], sizes = [8, 8], strides = [1, 1]} : vector<16x8xf32> to vector<8x8xf32>
    %245 = arith.truncf %244 : vector<8x8xf32> to vector<8x8xbf16>
    %246 = vector.extract_strided_slice %241 {offsets = [0, 0], sizes = [8, 8], strides = [1, 1]} : vector<16x8xf32> to vector<8x8xf32>
    %247 = arith.truncf %246 : vector<8x8xf32> to vector<8x8xbf16>
    %cst_93 = arith.constant dense<0.000000e+00> : vector<8x8xf32>
    %248 = tpu.matmul %243, %245, %cst_93 {dimension_numbers = #tpu.dot_dimension_numbers<[1], [1], [0], [0], [0, 0, 1, 0], [], []>} : vector<8x8xbf16>, vector<8x8xbf16>, vector<8x8xf32> -> vector<8x8xf32>
    %cst_94 = arith.constant 0.353553385 : f32
    %249 = vector.broadcast %cst_94 : f32 to vector<8x8xf32>
    %250 = arith.mulf %248, %249 : vector<8x8xf32>
    %cst_95 = arith.constant dense<0xFF800000> : vector<8xf32>
    %251 = vector.multi_reduction <maximumf>, %250, %cst_95 [1] : vector<8x8xf32> to vector<8xf32>
    %252 = vector.shape_cast %251 : vector<8xf32> to vector<8x1xf32>
    %253 = vector.broadcast %252 : vector<8x1xf32> to vector<8x8xf32>
    %254 = arith.subf %250, %253 : vector<8x8xf32>
    %255 = math.exp %254 : vector<8x8xf32>
    %cst_96 = arith.constant dense<0.000000e+00> : vector<8xf32>
    %256 = vector.multi_reduction <add>, %255, %cst_96 [1] : vector<8x8xf32> to vector<8xf32>
    %257 = vector.shape_cast %256 : vector<8xf32> to vector<8x1xf32>
    %258 = vector.broadcast %257 : vector<8x1xf32> to vector<8x8xf32>
    %259 = arith.divf %255, %258 : vector<8x8xf32>
    %260 = arith.truncf %259 : vector<8x8xf32> to vector<8x8xbf16>
    %cst_97 = arith.constant dense<0.000000e+00> : vector<8x8xf32>
    %261 = tpu.matmul %260, %247, %cst_97 {dimension_numbers = #tpu.dot_dimension_numbers<[1], [0], [0], [1], [0, 0, 1, 1], [], []>} : vector<8x8xbf16>, vector<8x8xbf16>, vector<8x8xf32> -> vector<8x8xf32>
    %262 = vector.extract_strided_slice %233 {offsets = [8, 0], sizes = [8, 8], strides = [1, 1]} : vector<16x8xf32> to vector<8x8xf32>
    %263 = arith.truncf %262 : vector<8x8xf32> to vector<8x8xbf16>
    %264 = vector.extract_strided_slice %237 {offsets = [8, 0], sizes = [8, 8], strides = [1, 1]} : vector<16x8xf32> to vector<8x8xf32>
    %265 = arith.truncf %264 : vector<8x8xf32> to vector<8x8xbf16>
    %266 = vector.extract_strided_slice %241 {offsets = [8, 0], sizes = [8, 8], strides = [1, 1]} : vector<16x8xf32> to vector<8x8xf32>
    %267 = arith.truncf %266 : vector<8x8xf32> to vector<8x8xbf16>
    %cst_98 = arith.constant dense<0.000000e+00> : vector<8x8xf32>
    %268 = tpu.matmul %263, %265, %cst_98 {dimension_numbers = #tpu.dot_dimension_numbers<[1], [1], [0], [0], [0, 0, 1, 0], [], []>} : vector<8x8xbf16>, vector<8x8xbf16>, vector<8x8xf32> -> vector<8x8xf32>
    %cst_99 = arith.constant 0.353553385 : f32
    %269 = vector.broadcast %cst_99 : f32 to vector<8x8xf32>
    %270 = arith.mulf %268, %269 : vector<8x8xf32>
    %cst_100 = arith.constant dense<0xFF800000> : vector<8xf32>
    %271 = vector.multi_reduction <maximumf>, %270, %cst_100 [1] : vector<8x8xf32> to vector<8xf32>
    %272 = vector.shape_cast %271 : vector<8xf32> to vector<8x1xf32>
    %273 = vector.broadcast %272 : vector<8x1xf32> to vector<8x8xf32>
    %274 = arith.subf %270, %273 : vector<8x8xf32>
    %275 = math.exp %274 : vector<8x8xf32>
    %cst_101 = arith.constant dense<0.000000e+00> : vector<8xf32>
    %276 = vector.multi_reduction <add>, %275, %cst_101 [1] : vector<8x8xf32> to vector<8xf32>
    %277 = vector.shape_cast %276 : vector<8xf32> to vector<8x1xf32>
    %278 = vector.broadcast %277 : vector<8x1xf32> to vector<8x8xf32>
    %279 = arith.divf %275, %278 : vector<8x8xf32>
    %280 = arith.truncf %279 : vector<8x8xf32> to vector<8x8xbf16>
    %cst_102 = arith.constant dense<0.000000e+00> : vector<8x8xf32>
    %281 = tpu.matmul %280, %267, %cst_102 {dimension_numbers = #tpu.dot_dimension_numbers<[1], [0], [0], [1], [0, 0, 1, 1], [], []>} : vector<8x8xbf16>, vector<8x8xbf16>, vector<8x8xf32> -> vector<8x8xf32>
    %282 = tpu.concatenate %261, %281 in 0 : vector<8x8xf32>, vector<8x8xf32> -> vector<16x8xf32>
    %283 = arith.truncf %282 : vector<16x8xf32> to vector<16x8xbf16>
    %cst_103 = arith.constant dense<0.000000e+00> : vector<16x32xf32>
    %284 = tpu.matmul %283, %229, %cst_103 {dimension_numbers = #tpu.dot_dimension_numbers<[1], [0], [0], [1], [0, 0, 1, 1], [], []>} : vector<16x8xbf16>, vector<8x32xbf16>, vector<16x32xf32> -> vector<16x32xf32>
    %285 = arith.addf %217, %284 : vector<16x32xf32>
    %286 = vector.broadcast %6 : vector<1x32xf32> to vector<16x32xf32>
    %287 = arith.addf %285, %286 : vector<16x32xf32>
    %288 = tpu.concatenate %29, %97, %165, %233 in 1 : vector<16x8xf32>, vector<16x8xf32>, vector<16x8xf32>, vector<16x8xf32> -> vector<16x32xf32>
    %289 = tpu.concatenate %33, %101, %169, %237 in 1 : vector<16x8xf32>, vector<16x8xf32>, vector<16x8xf32>, vector<16x8xf32> -> vector<16x32xf32>
    %290 = arith.addf %0, %287 : vector<16x32xf32>
    %cst_104 = arith.constant dense<0.000000e+00> : vector<16xf32>
    %291 = vector.multi_reduction <add>, %290, %cst_104 [1] : vector<16x32xf32> to vector<16xf32>
    %292 = vector.shape_cast %291 : vector<16xf32> to vector<16x1xf32>
    %cst_105 = arith.constant 3.200000e+01 : f32
    %293 = vector.broadcast %cst_105 : f32 to vector<16x1xf32>
    %294 = arith.divf %292, %293 : vector<16x1xf32>
    %295 = vector.broadcast %294 : vector<16x1xf32> to vector<16x32xf32>
    %296 = arith.subf %290, %295 : vector<16x32xf32>
    %297 = arith.mulf %296, %296 : vector<16x32xf32>
    %cst_106 = arith.constant dense<0.000000e+00> : vector<16xf32>
    %298 = vector.multi_reduction <add>, %297, %cst_106 [1] : vector<16x32xf32> to vector<16xf32>
    %299 = vector.shape_cast %298 : vector<16xf32> to vector<16x1xf32>
    %cst_107 = arith.constant 3.200000e+01 : f32
    %300 = vector.broadcast %cst_107 : f32 to vector<16x1xf32>
    %301 = arith.divf %299, %300 : vector<16x1xf32>
    %302 = vector.broadcast %294 : vector<16x1xf32> to vector<16x32xf32>
    %303 = arith.subf %290, %302 : vector<16x32xf32>
    %cst_108 = arith.constant 9.99999974E-6 : f32
    %304 = vector.broadcast %cst_108 : f32 to vector<16x1xf32>
    %305 = arith.addf %301, %304 : vector<16x1xf32>
    %306 = math.rsqrt %305 : vector<16x1xf32>
    %307 = vector.broadcast %306 : vector<16x1xf32> to vector<16x32xf32>
    %308 = arith.mulf %303, %307 : vector<16x32xf32>
    %309 = vector.broadcast %7 : vector<1x32xf32> to vector<16x32xf32>
    %310 = arith.mulf %308, %309 : vector<16x32xf32>
    %311 = vector.broadcast %8 : vector<1x32xf32> to vector<16x32xf32>
    %312 = arith.addf %310, %311 : vector<16x32xf32>
    %313 = arith.truncf %312 : vector<16x32xf32> to vector<16x32xbf16>
    %c0_109 = arith.constant 0 : index
    %c0_110 = arith.constant 0 : index
    %314 = vector.load %arg5[%c0_109, %c0_110] : memref<32x128xf32, #tpu.memory_space<vmem>>, vector<32x128xf32>
    %315 = arith.truncf %314 : vector<32x128xf32> to vector<32x128xbf16>
    %cst_111 = arith.constant dense<0.000000e+00> : vector<16x128xf32>
    %316 = tpu.matmul %313, %315, %cst_111 {dimension_numbers = #tpu.dot_dimension_numbers<[1], [0], [0], [1], [0, 0, 1, 1], [], []>} : vector<16x32xbf16>, vector<32x128xbf16>, vector<16x128xf32> -> vector<16x128xf32>
    %317 = vector.broadcast %11 : vector<1x128xf32> to vector<16x128xf32>
    %318 = arith.addf %316, %317 : vector<16x128xf32>
    %cst_112 = arith.constant 0.000000e+00 : f32
    %319 = vector.broadcast %cst_112 : f32 to vector<16x128xf32>
    %320 = arith.maximumf %318, %319 : vector<16x128xf32>
    %321 = arith.truncf %320 : vector<16x128xf32> to vector<16x128xbf16>
    %c0_113 = arith.constant 0 : index
    %c0_114 = arith.constant 0 : index
    %322 = vector.load %arg6[%c0_113, %c0_114] : memref<128x32xf32, #tpu.memory_space<vmem>>, vector<128x32xf32>
    %323 = arith.truncf %322 : vector<128x32xf32> to vector<128x32xbf16>
    %cst_115 = arith.constant dense<0.000000e+00> : vector<16x32xf32>
    %324 = tpu.matmul %321, %323, %cst_115 {dimension_numbers = #tpu.dot_dimension_numbers<[1], [0], [0], [1], [0, 0, 1, 1], [], []>} : vector<16x128xbf16>, vector<128x32xbf16>, vector<16x32xf32> -> vector<16x32xf32>
    %325 = vector.broadcast %12 : vector<1x32xf32> to vector<16x32xf32>
    %326 = arith.addf %324, %325 : vector<16x32xf32>
    %327 = arith.addf %312, %326 : vector<16x32xf32>
    %cst_116 = arith.constant dense<0.000000e+00> : vector<16xf32>
    %328 = vector.multi_reduction <add>, %327, %cst_116 [1] : vector<16x32xf32> to vector<16xf32>
    %329 = vector.shape_cast %328 : vector<16xf32> to vector<16x1xf32>
    %cst_117 = arith.constant 3.200000e+01 : f32
    %330 = vector.broadcast %cst_117 : f32 to vector<16x1xf32>
    %331 = arith.divf %329, %330 : vector<16x1xf32>
    %332 = vector.broadcast %331 : vector<16x1xf32> to vector<16x32xf32>
    %333 = arith.subf %327, %332 : vector<16x32xf32>
    %334 = arith.mulf %333, %333 : vector<16x32xf32>
    %cst_118 = arith.constant dense<0.000000e+00> : vector<16xf32>
    %335 = vector.multi_reduction <add>, %334, %cst_118 [1] : vector<16x32xf32> to vector<16xf32>
    %336 = vector.shape_cast %335 : vector<16xf32> to vector<16x1xf32>
    %cst_119 = arith.constant 3.200000e+01 : f32
    %337 = vector.broadcast %cst_119 : f32 to vector<16x1xf32>
    %338 = arith.divf %336, %337 : vector<16x1xf32>
    %339 = vector.broadcast %331 : vector<16x1xf32> to vector<16x32xf32>
    %340 = arith.subf %327, %339 : vector<16x32xf32>
    %cst_120 = arith.constant 9.99999974E-6 : f32
    %341 = vector.broadcast %cst_120 : f32 to vector<16x1xf32>
    %342 = arith.addf %338, %341 : vector<16x1xf32>
    %343 = math.rsqrt %342 : vector<16x1xf32>
    %344 = vector.broadcast %343 : vector<16x1xf32> to vector<16x32xf32>
    %345 = arith.mulf %340, %344 : vector<16x32xf32>
    %346 = vector.broadcast %9 : vector<1x32xf32> to vector<16x32xf32>
    %347 = arith.mulf %345, %346 : vector<16x32xf32>
    %348 = vector.broadcast %10 : vector<1x32xf32> to vector<16x32xf32>
    %349 = arith.addf %347, %348 : vector<16x32xf32>
    %c0_121 = arith.constant 0 : index
    %c0_122 = arith.constant 0 : index
    %350 = vector.load %arg8[%c0_121, %c0_122] : memref<16x32xf32, #tpu.memory_space<vmem>>, vector<16x32xf32>
    tpu.vector_store %arg8[%c0_121, %c0_122], %349 {strides = array<i32>} : memref<16x32xf32, #tpu.memory_space<vmem>>, vector<16x32xf32>,
    %c0_123 = arith.constant 0 : index
    %c0_124 = arith.constant 0 : index
    %351 = vector.load %arg9[%c0_123, %c0_124] : memref<16x32xf32, #tpu.memory_space<vmem>>, vector<16x32xf32>
    tpu.vector_store %arg9[%c0_123, %c0_124], %288 {strides = array<i32>} : memref<16x32xf32, #tpu.memory_space<vmem>>, vector<16x32xf32>,
    %c0_125 = arith.constant 0 : index
    %c0_126 = arith.constant 0 : index
    %352 = vector.load %arg10[%c0_125, %c0_126] : memref<16x32xf32, #tpu.memory_space<vmem>>, vector<16x32xf32>
    tpu.vector_store %arg10[%c0_125, %c0_126], %289 {strides = array<i32>} : memref<16x32xf32, #tpu.memory_space<vmem>>, vector<16x32xf32>,
    return
  }
}

</mosaic_0001>

<bundles_post_ra>
// kernel: encoder_layer_forward.1
= control target key start
LH: loop header
LB: loop body
LE: loop exit
PB: predicated region body
PF: predicated region fallthrough
CT: control target
= control target key end

     0   :  { %s2013_s0 = inlined_call_operand.vmem [shape: f32[16,32], index: 0, kind: input, shape index: {}]   ;;  %s2014_s1 = inlined_call_operand.vmem [shape: f32[4,32,8], index: 1, kind: input, shape index: {}]   ;;  %s2015_s2 = inlined_call_operand.vmem [shape: f32[4,32,8], index: 2, kind: input, shape index: {}]   ;;  %s2016_s3 = inlined_call_operand.vmem [shape: f32[4,32,8], index: 3, kind: input, shape index: {}]   ;;  %s2017_s4 = inlined_call_operand.vmem [shape: f32[4,8,32], index: 4, kind: input, shape index: {}]   ;;  %s2018_s5 = inlined_call_operand.vmem [shape: f32[32,128], index: 5, kind: input, shape index: {}]   ;;  %s2019_s6 = inlined_call_operand.vmem [shape: f32[128,32], index: 6, kind: input, shape index: {}]   ;;  %s2020_s7 = inlined_call_operand.vmem [shape: f32[16,128], index: 7, kind: input, shape index: {}]   ;;  %s2021_s8 = inlined_call_operand.hbm [shape: f32[16,32], index: 8, kind: output, shape index: {0}]   ;;  %s2022_s9 = inlined_call_operand.vmem [shape: f32[16,32], index: 9, kind: output, shape index: {1}]   ;;  %s2023_s10 = inlined_call_operand.vmem [shape: f32[16,32], index: 10, kind: output, shape index: {2}]  }
   0x1   :  { %v47_v0 = vld [vmem:[%s2015_s2 + $0x10] sm:$0xff]  ;;  %v48_v1 = vld [vmem:[%s2015_s2 + $0x18] sm:$0xff]  ;;  %v45_v2 = vld [vmem:[%s2015_s2] sm:$0xff] }
   0x2   :  { %v50_v3 = vpack.c.bf16 %v48_v1, %v47_v0  ;;  %v46_v4 = vld [vmem:[%s2015_s2 + $0x8] sm:$0xff]  ;;  %v41_v5 = vld [vmem:[%s2014_s1 + $0x10] sm:$0xff]  ;;  %v42_v6 = vld [vmem:[%s2014_s1 + $0x18] sm:$0xff] }
   0x3   :  { %v44_v7 = vpack.c.bf16 %v42_v6, %v41_v5  ;;  %v34_v8 = vld [vmem:[%s2013_s0] sm:$0xff]  ;;  %v49_v10 = vpack.c.bf16 %v46_v4, %v45_v2  ;;  %v35_v11 = vld [vmem:[%s2013_s0 + $0x8] sm:$0xff] }
   0x4   :  { %v39_v9 = vld [vmem:[%s2014_s1] sm:$0xff]  ;;  %85 = vmatpush.bf16.msra.mxu2 %v50_v3  ;;  %v40_v12 = vld [vmem:[%s2014_s1 + $0x8] sm:$0xff] }
   0x5   :  { %16 = vsyncpa [#allocation3], 0  ;;  %70 = vmatpush.bf16.msra.mxu0 %v44_v7  ;;  %v43_v13 = vpack.c.bf16 %v40_v12, %v39_v9  ;;  %v1483_v14 = vpack.c.bf16 %v35_v11, %v34_v8  ;;  %vm60_vm0 = vcmask 261120   ;;  %v37_v15 = vld [vmem:[%s2020_s7] sm:$0xff]  ;;  %vm111_vm1 = vcmask 64512   ;;  %v53_v32 = vld [vmem:[%s2016_s3 + $0x10] sm:$0xff] }
   0x6   :  { %v1492_v16 = vperm.slane %v37_v15, 1  ;;  %v1494_v18 = vperm.slane %v37_v15, 0  ;;  %v54_v33 = vld [vmem:[%s2016_s3 + $0x18] sm:$0xff]  ;;  %v51_v34 = vld [vmem:[%s2016_s3] sm:$0xff]  ;;  %v52_v36 = vld [vmem:[%s2016_s3 + $0x8] sm:$0xff]  ;;  %s1389_s23 = smov 120  }
   0x7   :  { %v56_v35 = vpack.c.bf16 %v54_v33, %v53_v32  ;;  %v55_v37 = vpack.c.bf16 %v52_v36, %v51_v34  ;;  %v1546_v57 = vperm.slane %v37_v15, 2  ;;  %vm160_vm2 = vcmask 1043456   ;;  %v1246_v1 = vld [vmem:[%s2014_s1 + $0x30] sm:$0xff]  ;;  %v1247_v2 = vld [vmem:[%s2014_s1 + $0x38] sm:$0xff]  ;;  %v1244_v4 = vld [vmem:[%s2014_s1 + $0x20] sm:$0xff]  ;;  %s1390_s28 = smov 112  }
   0x8   :  { %86 = vmatpush.bf16.msra.mxu2 %v49_v10  ;;  %288 = vrot.lane.b32.xlu1 %v1492_v16, %s1389_s23  ;;  %v251_v3 = vpack.c.bf16 %v1247_v2, %v1246_v1  ;;  %v1245_v5 = vld [vmem:[%s2014_s1 + $0x28] sm:$0xff]  ;;  %v1250_v6 = vld [vmem:[%s2015_s2 + $0x30] sm:$0xff]  ;;  %v1251_v7 = vld [vmem:[%s2015_s2 + $0x38] sm:$0xff]  ;;  %s1391_s18 = smov 104   ;;  %s1392_s27 = smov 8  }
   0x9   :  { %71 = vmatpush.bf16.msra.mxu0 %v43_v13  ;;  %v1248_v8 = vld [vmem:[%s2015_s2 + $0x20] sm:$0xff]  ;;  %v1249_v9 = vld [vmem:[%s2015_s2 + $0x28] sm:$0xff]  ;;  %v250_v10 = vpack.c.bf16 %v1245_v5, %v1244_v4  ;;  %v258_v11 = vpack.c.bf16 %v1251_v7, %v1250_v6  ;;  %v1254_v4 = vld [vmem:[%s2016_s3 + $0x30] sm:$0xff]  ;;  %s1393_s29 = smov 16   ;;  %s1394_s30 = smov 24  }
   0xa   :  { %v257_v12 = vpack.c.bf16 %v1249_v9, %v1248_v8  ;;  %v1255_v5 = vld [vmem:[%s2016_s3 + $0x38] sm:$0xff]  ;;  %v1252_v6 = vld [vmem:[%s2016_s3 + $0x20] sm:$0xff]  ;;  %v1253_v8 = vld [vmem:[%s2016_s3 + $0x28] sm:$0xff]  ;;  %s1217_s11 = sshll.u32 %s2021_s8, 4  ;;  %s1218_s11 = int_to_ptr.hbm [resolvable:$true] %s1217_s11 }
   0xb   :  { %1238 = vmatmul.msk.bf16.vlgmr.msra.gmra.mxu2 %vm60_vm0, %v1483_v14  ;;  %v265_v7 = vpack.c.bf16 %v1255_v5, %v1254_v4  ;;  %v264_v9 = vpack.c.bf16 %v1253_v8, %v1252_v6 }
   0xc   :  { %1237 = vmatmul.msk.bf16.vlgmr.msra.gmra.mxu0 %vm60_vm0, %v1483_v14  ;;  %100 = vmatpush.bf16.msrb.mxu2 %v56_v35 }
  0x10   :  { %101 = vmatpush.bf16.msrb.mxu2 %v55_v37  ;;  %270 = vrot.lane.b32.xlu1 %v1494_v18, %s1389_s23 }
  0x1b   :  { %1239 = vmatmul.msk.bf16.vlgmr.msrb.gmra.mxu2 %vm60_vm0, %v1483_v14 }
  0x89   :  { %v73_v20 = vpop.f32.mrf.mxu0 }
  0x8a   :  { %v1502_v22 = vadd.f32 %v73_v20, %v1494_v18 }
  0x8c   :  { %v108_v25 = vpack.c.bf16 %v1502_v22, %v1502_v22 }
  0x8e   :  { %v88_v17 = vpop.f32.mrf.mxu2 }
  0x8f   :  { %v1497_v19 = vadd.f32 %v88_v17, %v1492_v16 }
  0x91   :  { %v109_v21 = vpack.c.bf16 %v1497_v19, %v1497_v19  ;;  %v75_v28 = vpop.f32.mrf.mxu0 }
  0x92   :  { %v1515_v30 = vadd.f32 %v75_v28, %v1494_v18 }
  0x93   :  { %v116_v23 = vsel %vm111_vm1, %v109_v21, 0 }
  0x94   :  { %125 = vmatpush.bf16.xpose.msra.mxu3 %v116_v23  ;;  %v177_v31 = vpack.c.bf16 %v1515_v30, %v1515_v30 }
  0x96   :  { %v90_v24 = vpop.f32.mrf.mxu2 }
  0x97   :  { %v1508_v26 = vadd.f32 %v90_v24, %v1492_v16 }
  0x99   :  { %v178_v27 = vpack.c.bf16 %v1508_v26, %v1508_v26 }
  0x9b   :  { %1240 = vmatmul.msk.bf16.vlgmr.msra.gmra.mxu3 %vm111_vm1, %v108_v25  ;;  %v184_v29 = vsel %vm111_vm1, %v178_v27, 0 }
  0x9c   :  { %193 = vmatpush.bf16.xpose.msra.mxu1 %v184_v29  ;;  %279 = vmatpush.bf16.msrb.mxu3 %v251_v3 }
  0x9e   :  { %v103_v56 = vpop.f32.mrf.mxu2 }
  0x9f   :  { %v104_v59 = vadd.f32 %v103_v56, %v1546_v57 }
  0xa0   :  { %280 = vmatpush.bf16.msrb.mxu3 %v250_v10 }
  0xa1   :  { %v110_v61 = vpack.c.bf16 %v104_v59, %v104_v59 }
  0xa3   :  { %1242 = vmatmul.msk.bf16.vlgmr.msra.gmra.mxu1 %vm111_vm1, %v177_v31  ;;  %v162_v0 = vsel %vm160_vm2, %v110_v61, 0 }
  0xa4   :  { %171 = vmatpush.bf16.msrb.mxu0 %v162_v0  ;;  %315 = vmatpush.bf16.msrb.mxu1 %v265_v7 }
  0xa6   :  { %v105_v58 = vpop.f32.mrf.mxu2 }
  0xa7   :  { %v106_v60 = vadd.f32 %v105_v58, %v1546_v57 }
  0xa8   :  { %297 = vmatpush.bf16.msra.mxu0 %v258_v11  ;;  %316 = vmatpush.bf16.msrb.mxu1 %v264_v9 }
  0xa9   :  { %v179_v62 = vpack.c.bf16 %v106_v60, %v106_v60 }
  0xab   :  { %v229_v63 = vsel %vm160_vm2, %v179_v62, 0  ;;  %1257 = vmatmul.msk.bf16.vlgmr.msrb.gmra.mxu3 %vm60_vm0, %v1483_v14 }
  0xac   :  { %238 = vmatpush.bf16.msra.mxu2 %v229_v63  ;;  %298 = vmatpush.bf16.msra.mxu0 %v257_v12 }
  0xb3   :  { %1259 = vmatmul.msk.bf16.vlgmr.msrb.gmra.mxu1 %vm60_vm0, %v1483_v14 }
 0x11e   :  { %v127_v38 = vpop.f32.mrf.mxu3 }
 0x11f   :  { %v131_v39 = vmul.f32 0.35355338, %v127_v38 }
 0x120   :  { %v195_v40 = vpop.f32.mrf.mxu1 }
 0x121   :  { %v199_v41 = vmul.f32 0.35355338, %v195_v40  ;;  %v132_v42 = vsel %vm111_vm1, %v131_v39, -inf }
 0x122   :  { %133 = vmax.xlane.f32.xlu0 %v132_v42 }
 0x123   :  { %v200_v43 = vsel %vm111_vm1, %v199_v41, -inf }
 0x124   :  { %201 = vmax.xlane.f32.xlu2 %v200_v43 }
 0x126   :  { %v129_v44 = vpop.f32.mrf.mxu3 }
 0x128   :  { %v197_v45 = vpop.f32.mrf.mxu1 }
 0x195   :  { %v134_v46 = vpop.xlane.xlu0 %133 }
 0x196   :  { %v135_v47 = vsub.f32 %v131_v39, %v134_v46 }
 0x197   :  { %v202_v48 = vpop.xlane.xlu2 %201 }
 0x198   :  { %v136_v49 = vmul.f32 1.442695, %v135_v47  ;;  %v203_v50 = vsub.f32 %v199_v41, %v202_v48  ;;  %v289_v47 = vpop.permute.xlu1 %288 }
 0x19a   :  { %1318 = vpow2.f32 %v136_v49  ;;  %v204_v51 = vmul.f32 1.442695, %v203_v50 }
 0x19c   :  { %1320 = vpow2.f32 %v204_v51 }
 0x1a0   :  { %v1536_v52 = vpop.eup %1318 }
 0x1a1   :  { %v138_v53 = vsel %vm111_vm1, %v1536_v52, 0.0 }
 0x1a2   :  { %v1540_v54 = vpop.eup %1320  ;;  %139 = vadd.xlane.f32.xlu0 %v138_v53 }
 0x1a3   :  { %v206_v55 = vsel %vm111_vm1, %v1540_v54, 0.0 }
 0x1a4   :  { %207 = vadd.xlane.f32.xlu2 %v206_v55  ;;  %v271_v55 = vpop.permute.xlu1 %270 }
 0x1bc   :  { %306 = vrot.lane.b32.xlu2 %v1546_v57, %s1389_s23 }
 0x1c4   :  { %522 = vrot.lane.b32.xlu2 %v1494_v18, %s1390_s28 }
 0x215   :  { %v140_v13 = vpop.xlane.xlu0 %139 }
 0x216   :  { %1322 = vrcp.f32 %v140_v13  ;;  %v152_v25 = vand.u32 2147483648, %v140_v13  ;;  %v150_v28 = vand.u32 2147483647, %v140_v13  ;;  %vm146_vm4 = vweird.f32 %v140_v13 }
 0x217   :  { %v208_v15 = vpop.xlane.xlu2 %207 }
 0x218   :  { %1324 = vrcp.f32 %v208_v15  ;;  %v220_v31 = vand.u32 2147483648, %v208_v15  ;;  %v218_v34 = vand.u32 2147483647, %v208_v15  ;;  %v153_v35 = vor.u32 1.1754944e-38, %v152_v25 }
 0x219   :  { %vm151_vm7 = vcmp.eq.f32.partialorder %v150_v28, 8.507059e+37  ;;  %vm214_vm8 = vweird.f32 %v208_v15 }
 0x21a   :  { %v221_v38 = vor.u32 1.1754944e-38, %v220_v31  ;;  %vm219_vm10 = vcmp.eq.f32.partialorder %v218_v34, 8.507059e+37 }
 0x21c   :  { %v1323_v17 = vpop.eup %1322 }
 0x21d   :  { %v142_v20 = vmul.f32 %v1323_v17, %v140_v13  ;;  %vm147_vm3 = vweird.f32 %v1323_v17 }
 0x21e   :  { %v1325_v21 = vpop.eup %1324  ;;  %vm148_vm6 = vmor %vm146_vm4, %vm147_vm3 }
 0x21f   :  { %v143_v23 = vsub.f32 1.0, %v142_v20  ;;  %v210_v24 = vmul.f32 %v1325_v21, %v208_v15  ;;  %vm215_vm5 = vweird.f32 %v1325_v21 }
 0x220   :  { %vm216_vm9 = vmor %vm214_vm8, %vm215_vm5 }
 0x221   :  { %v144_v27 = vmul.f32 %v1323_v17, %v143_v23  ;;  %v211_v29 = vsub.f32 1.0, %v210_v24 }
 0x223   :  { %v145_v32 = vadd.f32 %v1323_v17, %v144_v27  ;;  %v212_v33 = vmul.f32 %v1325_v21, %v211_v29 }
 0x225   :  { %v213_v36 = vadd.f32 %v1325_v21, %v212_v33  ;;  %v149_v37 = vsel %vm148_vm6, %v1323_v17, %v145_v32 }
 0x226   :  { %v154_v39 = vsel %vm151_vm7, %v153_v35, %v149_v37  ;;  %v318_v35 = vpop.f32.mrf.mxu1 }
 0x227   :  { %v217_v40 = vsel %vm216_vm9, %v1325_v21, %v213_v36  ;;  %v155_v41 = vmul.f32 %v1536_v52, %v154_v39  ;;  %v307_v36 = vpop.permute.xlu2 %306 }
 0x228   :  { %v222_v42 = vsel %vm219_vm10, %v221_v38, %v217_v40  ;;  %v319_v38 = vadd.f32 %v318_v35, %v307_v36 }
 0x229   :  { %v223_v43 = vmul.f32 %v1540_v54, %v222_v42  ;;  %v156_v44 = vpack.c.bf16 %v155_v41, %v155_v41  ;;  %v282_v54 = vpop.f32.mrf.mxu3 }
 0x22a   :  { %v1596_v59 = vadd.f32 %v282_v54, %v271_v55  ;;  %v325_v40 = vpack.c.bf16 %v319_v38, %v319_v38  ;;  %v1267_v54 = vld [vmem:[%s2014_s1 + $0x48] sm:$0xff] }
 0x22b   :  { %1241 = vmatmul.msk.bf16.vlgmr.msrb.gmra.mxu0 %vm111_vm1, %v156_v44  ;;  %v224_v45 = vpack.c.bf16 %v223_v43, %v223_v43  ;;  %v1268_v44 = vld [vmem:[%s2014_s1 + $0x50] sm:$0xff] }
 0x22c   :  { %v323_v61 = vpack.c.bf16 %v1596_v59, %v1596_v59  ;;  %v375_v43 = vsel %vm160_vm2, %v325_v40, 0 }
 0x22d   :  { %1243 = vmatmul.msk.bf16.vlgmr.msra.gmra.mxu2 %vm111_vm1, %v224_v45  ;;  %384 = vmatpush.bf16.msra.mxu3 %v375_v43  ;;  %v1269_v45 = vld [vmem:[%s2014_s1 + $0x58] sm:$0xff] }
 0x22e   :  { %v320_v37 = vpop.f32.mrf.mxu1 }
 0x22f   :  { %v321_v39 = vadd.f32 %v320_v37, %v307_v36 }
 0x231   :  { %v284_v0 = vpop.f32.mrf.mxu3  ;;  %v392_v41 = vpack.c.bf16 %v321_v39, %v321_v39 }
 0x232   :  { %v1606_v2 = vadd.f32 %v284_v0, %v271_v55  ;;  %v57_v0 = vld [vmem:[%s2017_s4] sm:$0xff] }
 0x233   :  { %v442_v42 = vsel %vm160_vm2, %v392_v41, 0 }
 0x234   :  { %v390_v3 = vpack.c.bf16 %v1606_v2, %v1606_v2  ;;  %451 = vmatpush.bf16.msra.mxu1 %v442_v42 }
 0x23b   :  { %1258 = vmatmul.msk.bf16.vlgmr.msra.gmra.mxu0 %vm60_vm0, %v1483_v14 }
 0x2a8   :  { %v1585_v46 = vpop.f32.mrf.mxu0 }
 0x2b0   :  { %v175_v48 = vpop.f32.mrf.mxu0  ;;  %v1587_v49 = vpop.f32.mrf.mxu2 }
 0x2b1   :  { %v244_v50 = vpack.c.bf16 %v1587_v49, %v1585_v46  ;;  %v504_v48 = vpack.c.bf16 %v1269_v45, %v1268_v44  ;;  %v523_v49 = vpop.permute.xlu2 %522 }
 0x2b8   :  { %v242_v51 = vpop.f32.mrf.mxu2  ;;  %v300_v52 = vpop.f32.mrf.mxu0 }
 0x2b9   :  { %v1591_v53 = vadd.f32 %v300_v52, %v289_v47  ;;  %v1273_v51 = vld [vmem:[%s2015_s2 + $0x58] sm:$0xff]  ;;  %v1266_v52 = vld [vmem:[%s2014_s1 + $0x40] sm:$0xff] }
 0x2bb   :  { %v324_v56 = vpack.c.bf16 %v1591_v53, %v1591_v53 }
 0x2bd   :  { %v330_v58 = vsel %vm111_vm1, %v324_v56, 0  ;;  %v1270_v56 = vld [vmem:[%s2015_s2 + $0x40] sm:$0xff] }
 0x2be   :  { %339 = vmatpush.bf16.xpose.msrb.mxu2 %v330_v58  ;;  %v1271_v58 = vld [vmem:[%s2015_s2 + $0x48] sm:$0xff] }
 0x2c0   :  { %v302_v60 = vpop.f32.mrf.mxu0 }
 0x2c1   :  { %v1600_v62 = vadd.f32 %v302_v60, %v289_v47  ;;  %v1272_v47 = vld [vmem:[%s2015_s2 + $0x50] sm:$0xff] }
 0x2c2   :  { %v511_v55 = vpack.c.bf16 %v1273_v51, %v1272_v47 }
 0x2c3   :  { %v391_v63 = vpack.c.bf16 %v1600_v62, %v1600_v62 }
 0x2c4   :  { %548 = vmatpush.bf16.msrb.mxu1 %v511_v55 }
 0x2c5   :  { %1260 = vmatmul.msk.bf16.vlgmr.msrb.gmra.mxu2 %vm111_vm1, %v323_v61  ;;  %v397_v1 = vsel %vm111_vm1, %v391_v63, 0  ;;  %v503_v61 = vpack.c.bf16 %v1267_v54, %v1266_v52  ;;  %v510_v63 = vpack.c.bf16 %v1271_v58, %v1270_v56 }
 0x2c6   :  { %406 = vmatpush.bf16.xpose.msrb.mxu0 %v397_v1 }
 0x2c8   :  { %549 = vmatpush.bf16.msrb.mxu1 %v510_v63 }
 0x2cd   :  { %1262 = vmatmul.msk.bf16.vlgmr.msrb.gmra.mxu0 %vm111_vm1, %v390_v3  ;;  %v58_v3 = vpack.c.bf16 %v57_v0, %v57_v0 }
 0x2ce   :  { %531 = vmatpush.bf16.msra.mxu0 %v504_v48 }
 0x2cf   :  { %v482_v7 = vsel %vm160_vm2, %v58_v3, 0 }
 0x2d0   :  { %491 = vmatpush.bf16.msrb.mxu3 %v482_v7 }
 0x2d2   :  { %532 = vmatpush.bf16.msra.mxu0 %v503_v61 }
 0x2dd   :  { %1279 = vmatmul.msk.bf16.vlgmr.msra.gmra.mxu0 %vm60_vm0, %v1483_v14 }
 0x348   :  { %v341_v10 = vpop.f32.mrf.mxu2 }
 0x349   :  { %v345_v17 = vmul.f32 0.35355338, %v341_v10 }
 0x34a   :  { %v408_v11 = vpop.f32.mrf.mxu0 }
 0x34b   :  { %v412_v12 = vmul.f32 0.35355338, %v408_v11  ;;  %v346_v21 = vsel %vm111_vm1, %v345_v17, -inf }
 0x34d   :  { %v413_v13 = vsel %vm111_vm1, %v412_v12, -inf }
 0x34e   :  { %414 = vmax.xlane.f32.xlu0 %v413_v13 }
 0x350   :  { %v343_v15 = vpop.f32.mrf.mxu2 }
 0x352   :  { %v410_v20 = vpop.f32.mrf.mxu0 }
 0x356   :  { %347 = vmax.xlane.f32.xlu0 %v346_v21 }
 0x35a   :  { %v534_v46 = vpop.f32.mrf.mxu0 }
 0x35b   :  { %v1691_v48 = vadd.f32 %v534_v46, %v523_v49 }
 0x35d   :  { %v573_v54 = vpack.c.bf16 %v1691_v48, %v1691_v48 }
 0x362   :  { %v536_v58 = vpop.f32.mrf.mxu0 }
 0x363   :  { %v1701_v61 = vadd.f32 %v536_v58, %v523_v49 }
 0x365   :  { %v640_v63 = vpack.c.bf16 %v1701_v61, %v1701_v61 }
 0x3c1   :  { %v415_v23 = vpop.xlane.xlu0 %414 }
 0x3c2   :  { %v416_v24 = vsub.f32 %v412_v12, %v415_v23 }
 0x3c4   :  { %v417_v25 = vmul.f32 1.442695, %v416_v24 }
 0x3c6   :  { %1326 = vpow2.f32 %v417_v25 }
 0x3c9   :  { %v348_v27 = vpop.xlane.xlu0 %347 }
 0x3ca   :  { %v349_v28 = vsub.f32 %v345_v17, %v348_v27 }
 0x3cc   :  { %v1627_v29 = vpop.eup %1326  ;;  %v350_v31 = vmul.f32 1.442695, %v349_v28 }
 0x3cd   :  { %v419_v32 = vsel %vm111_vm1, %v1627_v29, 0.0 }
 0x3ce   :  { %1328 = vpow2.f32 %v350_v31  ;;  %420 = vadd.xlane.f32.xlu1 %v419_v32 }
 0x3d4   :  { %v1631_v33 = vpop.eup %1328 }
 0x3d5   :  { %v352_v34 = vsel %vm111_vm1, %v1631_v33, 0.0 }
 0x3d6   :  { %353 = vadd.xlane.f32.xlu0 %v352_v34 }
 0x3ea   :  { %539 = vrot.lane.b32.xlu0 %v1492_v16, %s1390_s28 }
 0x441   :  { %v421_v60 = vpop.xlane.xlu1 %420 }
 0x442   :  { %1330 = vrcp.f32 %v421_v60  ;;  %v433_v8 = vand.u32 2147483648, %v421_v60  ;;  %v431_v10 = vand.u32 2147483647, %v421_v60  ;;  %vm427_vm12 = vweird.f32 %v421_v60 }
 0x444   :  { %v434_v13 = vor.u32 1.1754944e-38, %v433_v8  ;;  %vm432_vm14 = vcmp.eq.f32.partialorder %v431_v10, 8.507059e+37 }
 0x448   :  { %v1331_v1 = vpop.eup %1330 }
 0x449   :  { %v423_v4 = vmul.f32 %v1331_v1, %v421_v60  ;;  %v354_v5 = vpop.xlane.xlu0 %353  ;;  %vm428_vm11 = vweird.f32 %v1331_v1 }
 0x44a   :  { %1332 = vrcp.f32 %v354_v5  ;;  %vm429_vm13 = vmor %vm427_vm12, %vm428_vm11  ;;  %v366_v24 = vand.u32 2147483648, %v354_v5  ;;  %v364_v27 = vand.u32 2147483647, %v354_v5  ;;  %vm360_vm3 = vweird.f32 %v354_v5 }
 0x44b   :  { %v424_v6 = vsub.f32 1.0, %v423_v4 }
 0x44c   :  { %v367_v32 = vor.u32 1.1754944e-38, %v366_v24  ;;  %vm365_vm5 = vcmp.eq.f32.partialorder %v364_v27, 8.507059e+37 }
 0x44d   :  { %v425_v9 = vmul.f32 %v1331_v1, %v424_v6 }
 0x44f   :  { %v426_v11 = vadd.f32 %v1331_v1, %v425_v9 }
 0x450   :  { %v1333_v12 = vpop.eup %1332 }
 0x451   :  { %v430_v15 = vsel %vm429_vm13, %v1331_v1, %v426_v11  ;;  %v356_v17 = vmul.f32 %v1333_v12, %v354_v5  ;;  %vm361_vm15 = vweird.f32 %v1333_v12  ;;  %v1276_v11 = vld [vmem:[%s2016_s3 + $0x50] sm:$0xff] }
 0x452   :  { %v435_v20 = vsel %vm432_vm14, %v434_v13, %v430_v15  ;;  %vm362_vm4 = vmor %vm360_vm3, %vm361_vm15  ;;  %v1274_v15 = vld [vmem:[%s2016_s3 + $0x40] sm:$0xff] }
 0x453   :  { %v436_v21 = vmul.f32 %v1627_v29, %v435_v20  ;;  %v357_v23 = vsub.f32 1.0, %v356_v17  ;;  %v1256_v29 = vld [vmem:[%s2017_s4 + $0x8] sm:$0xff] }
 0x454   :  { %v268_v38 = vpack.c.bf16 %v1256_v29, %v1256_v29  ;;  %v1275_v17 = vld [vmem:[%s2016_s3 + $0x48] sm:$0xff] }
 0x455   :  { %v358_v25 = vmul.f32 %v1333_v12, %v357_v23  ;;  %v437_v28 = vpack.c.bf16 %v436_v21, %v436_v21  ;;  %v517_v20 = vpack.c.bf16 %v1275_v17, %v1274_v15 }
 0x456   :  { %v462_v39 = vsel %vm160_vm2, %v268_v38, 0 }
 0x457   :  { %v359_v31 = vadd.f32 %v1333_v12, %v358_v25  ;;  %1263 = vmatmul.msk.bf16.vlgmr.msra.gmra.mxu1 %vm111_vm1, %v437_v28  ;;  %471 = vmatpush.bf16.msra.mxu2 %v462_v39  ;;  %v1291_v39 = vld [vmem:[%s2015_s2 + $0x60] sm:$0xff] }
 0x459   :  { %v363_v34 = vsel %vm362_vm4, %v1333_v12, %v359_v31  ;;  %v1277_v12 = vld [vmem:[%s2016_s3 + $0x58] sm:$0xff] }
 0x45a   :  { %v368_v35 = vsel %vm365_vm5, %v367_v32, %v363_v34  ;;  %v518_v13 = vpack.c.bf16 %v1277_v12, %v1276_v11 }
 0x45b   :  { %v369_v36 = vmul.f32 %v1631_v33, %v368_v35 }
 0x45c   :  { %v540_v42 = vpop.permute.xlu0 %539  ;;  %565 = vmatpush.bf16.msrb.mxu2 %v518_v13 }
 0x45d   :  { %v370_v37 = vpack.c.bf16 %v369_v36, %v369_v36  ;;  %v1293_v36 = vld [vmem:[%s2015_s2 + $0x70] sm:$0xff] }
 0x45f   :  { %1261 = vmatmul.msk.bf16.vlgmr.msra.gmra.mxu3 %vm111_vm1, %v370_v37  ;;  %v1294_v37 = vld [vmem:[%s2015_s2 + $0x78] sm:$0xff] }
 0x460   :  { %566 = vmatpush.bf16.msrb.mxu2 %v517_v20  ;;  %v743_v29 = vpack.c.bf16 %v1294_v37, %v1293_v36 }
 0x467   :  { %1280 = vmatmul.msk.bf16.vlgmr.msrb.gmra.mxu1 %vm60_vm0, %v1483_v14 }
 0x46f   :  { %1265 = vmatmul.msk.bf16.vlgmr.msrb.gmra.mxu3 %vm111_vm1, %v244_v50 }
 0x4d4   :  { %v453_v33 = vpop.f32.mrf.mxu1 }
 0x4dc   :  { %v455_v40 = vpop.f32.mrf.mxu1 }
 0x4e2   :  { %v386_v41 = vpop.f32.mrf.mxu3 }
 0x4e3   :  { %v457_v43 = vpack.c.bf16 %v453_v33, %v386_v41 }
 0x4e4   :  { %v551_v44 = vpop.f32.mrf.mxu1 }
 0x4e5   :  { %v1685_v45 = vadd.f32 %v551_v44, %v540_v42  ;;  %1264 = vmatmul.msk.bf16.vlgmr.msra.gmra.mxu2 %vm111_vm1, %v457_v43 }
 0x4e7   :  { %v574_v50 = vpack.c.bf16 %v1685_v45, %v1685_v45 }
 0x4e9   :  { %v580_v47 = vsel %vm111_vm1, %v574_v50, 0 }
 0x4ea   :  { %v388_v51 = vpop.f32.mrf.mxu3  ;;  %589 = vmatpush.bf16.xpose.msra.mxu3 %v580_v47 }
 0x4ec   :  { %v553_v52 = vpop.f32.mrf.mxu1 }
 0x4ed   :  { %v1695_v55 = vadd.f32 %v553_v52, %v540_v42 }
 0x4ef   :  { %v641_v56 = vpack.c.bf16 %v1695_v55, %v1695_v55 }
 0x4f1   :  { %1282 = vmatmul.msk.bf16.vlgmr.msra.gmra.mxu3 %vm111_vm1, %v573_v54  ;;  %v647_v60 = vsel %vm111_vm1, %v641_v56, 0 }
 0x4f2   :  { %656 = vmatpush.bf16.xpose.msra.mxu1 %v647_v60  ;;  %v1706_v0 = vpop.f32.mrf.mxu3 }
 0x4f5   :  { %1281 = vmatmul.msk.bf16.vlgmr.msrb.gmra.mxu2 %vm60_vm0, %v1483_v14 }
 0x4f9   :  { %1284 = vmatmul.msk.bf16.vlgmr.msra.gmra.mxu1 %vm111_vm1, %v640_v63 }
 0x4fa   :  { %v1708_v1 = vpop.f32.mrf.mxu3  ;;  %780 = vmatpush.bf16.msrb.mxu1 %v743_v29  ;;  %v1278_v29 = vld [vmem:[%s2017_s4 + $0x10] sm:$0xff] }
 0x568   :  { %v1740_v38 = vpop.f32.mrf.mxu2 }
 0x570   :  { %v1750_v41 = vpop.f32.mrf.mxu2 }
 0x574   :  { %v591_v3 = vpop.f32.mrf.mxu3 }
 0x575   :  { %v595_v4 = vmul.f32 0.35355338, %v591_v3 }
 0x576   :  { %v658_v5 = vpop.f32.mrf.mxu1 }
 0x577   :  { %v662_v6 = vmul.f32 0.35355338, %v658_v5  ;;  %v596_v7 = vsel %vm111_vm1, %v595_v4, -inf }
 0x578   :  { %597 = vmax.xlane.f32.xlu2 %v596_v7  ;;  %v568_v47 = vpop.f32.mrf.mxu2 }
 0x579   :  { %v663_v8 = vsel %vm111_vm1, %v662_v6, -inf }
 0x57a   :  { %664 = vmax.xlane.f32.xlu1 %v663_v8 }
 0x57c   :  { %v593_v9 = vpop.f32.mrf.mxu3 }
 0x57d   :  { %v1289_v9 = vld [vmem:[%s2014_s1 + $0x70] sm:$0xff] }
 0x57e   :  { %v660_v10 = vpop.f32.mrf.mxu1 }
 0x57f   :  { %v1290_v10 = vld [vmem:[%s2014_s1 + $0x78] sm:$0xff] }
 0x580   :  { %v570_v8 = vpop.f32.mrf.mxu2  ;;  %v736_v20 = vpack.c.bf16 %v1290_v10, %v1289_v9  ;;  %v1296_v10 = vld [vmem:[%s2016_s3 + $0x68] sm:$0xff] }
 0x590   :  { %771 = vrot.lane.b32.xlu2 %v1492_v16, %s1391_s18  ;;  %v1292_v16 = vld [vmem:[%s2015_s2 + $0x68] sm:$0xff] }
 0x5eb   :  { %v598_v21 = vpop.xlane.xlu2 %597 }
 0x5ec   :  { %v599_v23 = vsub.f32 %v595_v4, %v598_v21 }
 0x5ed   :  { %v665_v24 = vpop.xlane.xlu1 %664 }
 0x5ee   :  { %v600_v25 = vmul.f32 1.442695, %v599_v23  ;;  %v666_v27 = vsub.f32 %v662_v6, %v665_v24 }
 0x5f0   :  { %1334 = vpow2.f32 %v600_v25  ;;  %v667_v28 = vmul.f32 1.442695, %v666_v27  ;;  %v1287_v27 = vld [vmem:[%s2014_s1 + $0x60] sm:$0xff] }
 0x5f2   :  { %1336 = vpow2.f32 %v667_v28  ;;  %v1288_v28 = vld [vmem:[%s2014_s1 + $0x68] sm:$0xff]  ;;  %s1397_s1 = smov 128  }
 0x5f6   :  { %v1335_v31 = vpop.eup %1334 }
 0x5f7   :  { %v602_v32 = vsel %vm111_vm1, %v1335_v31, 0.0 }
 0x5f8   :  { %v1337_v34 = vpop.eup %1336  ;;  %603 = vadd.xlane.f32.xlu0 %v602_v32 }
 0x5f9   :  { %v669_v35 = vsel %vm111_vm1, %v1337_v34, 0.0 }
 0x5fa   :  { %670 = vadd.xlane.f32.xlu1 %v669_v35 }
 0x613   :  { %556 = vrot.lane.b32.xlu1 %v1546_v57, %s1390_s28 }
 0x61b   :  { %754 = vrot.lane.b32.xlu1 %v1494_v18, %s1391_s18  ;;  %v742_v18 = vpack.c.bf16 %v1292_v16, %v1291_v39  ;;  %v521_v39 = vpack.c.bf16 %v1278_v29, %v1278_v29 }
 0x61d   :  { %781 = vmatpush.bf16.msrb.mxu1 %v742_v18  ;;  %v712_v16 = vsel %vm160_vm2, %v521_v39, 0  ;;  %v772_v18 = vpop.permute.xlu2 %771 }
 0x61e   :  { %721 = vmatpush.bf16.msrb.mxu3 %v712_v16 }
 0x620   :  { %1301 = vmatmul.msk.bf16.vlgmr.msrb.gmra.mxu1 %vm60_vm0, %v1483_v14 }
 0x66b   :  { %v604_v33 = vpop.xlane.xlu0 %603 }
 0x66c   :  { %1338 = vrcp.f32 %v604_v33  ;;  %vm610_vm8 = vweird.f32 %v604_v33  ;;  %v616_v58 = vand.u32 2147483648, %v604_v33  ;;  %v614_v63 = vand.u32 2147483647, %v604_v33 }
 0x66d   :  { %v671_v40 = vpop.xlane.xlu1 %670 }
 0x66e   :  { %1340 = vrcp.f32 %v671_v40  ;;  %v683_v60 = vand.u32 2147483648, %v671_v40  ;;  %vm677_vm10 = vweird.f32 %v671_v40  ;;  %v681_v3 = vand.u32 2147483647, %v671_v40 }
 0x66f   :  { %v617_v6 = vor.u32 1.1754944e-38, %v616_v58  ;;  %vm615_vm12 = vcmp.eq.f32.partialorder %v614_v63, 8.507059e+37 }
 0x670   :  { %v684_v7 = vor.u32 1.1754944e-38, %v683_v60  ;;  %vm682_vm13 = vcmp.eq.f32.partialorder %v681_v3, 8.507059e+37 }
 0x672   :  { %v1339_v42 = vpop.eup %1338 }
 0x673   :  { %v606_v43 = vmul.f32 %v1339_v42, %v604_v33  ;;  %vm611_vm6 = vweird.f32 %v1339_v42 }
 0x674   :  { %v1341_v44 = vpop.eup %1340  ;;  %vm612_vm9 = vmor %vm610_vm8, %vm611_vm6 }
 0x675   :  { %v673_v46 = vmul.f32 %v1341_v44, %v671_v40  ;;  %v607_v49 = vsub.f32 1.0, %v606_v43  ;;  %vm678_vm7 = vweird.f32 %v1341_v44 }
 0x676   :  { %vm679_vm11 = vmor %vm677_vm10, %vm678_vm7 }
 0x677   :  { %v674_v50 = vsub.f32 1.0, %v673_v46  ;;  %v608_v51 = vmul.f32 %v1339_v42, %v607_v49 }
 0x679   :  { %v675_v52 = vmul.f32 %v1341_v44, %v674_v50  ;;  %v609_v54 = vadd.f32 %v1339_v42, %v608_v51 }
 0x67b   :  { %v676_v56 = vadd.f32 %v1341_v44, %v675_v52  ;;  %v613_v4 = vsel %vm612_vm9, %v1339_v42, %v609_v54 }
 0x67c   :  { %v618_v11 = vsel %vm615_vm12, %v617_v6, %v613_v4  ;;  %v1297_v6 = vld [vmem:[%s2016_s3 + $0x70] sm:$0xff] }
 0x67d   :  { %v680_v5 = vsel %vm679_vm11, %v1341_v44, %v676_v56  ;;  %v619_v21 = vmul.f32 %v1335_v31, %v618_v11  ;;  %v735_v31 = vpack.c.bf16 %v1288_v28, %v1287_v27 }
 0x67e   :  { %v685_v12 = vsel %vm682_vm13, %v684_v7, %v680_v5  ;;  %v1298_v7 = vld [vmem:[%s2016_s3 + $0x78] sm:$0xff] }
 0x67f   :  { %v686_v23 = vmul.f32 %v1337_v34, %v685_v12  ;;  %v620_v36 = vpack.c.bf16 %v619_v21, %v619_v21  ;;  %v750_v9 = vpack.c.bf16 %v1298_v7, %v1297_v6  ;;  %v494_v12 = vadd.f32 %v1706_v0, %v1740_v38 }
 0x681   :  { %v687_v37 = vpack.c.bf16 %v686_v23, %v686_v23 }
 0x685   :  { %v557_v13 = vpop.permute.xlu1 %556 }
 0x686   :  { %v569_v15 = vadd.f32 %v568_v47, %v557_v13  ;;  %v571_v17 = vadd.f32 %v570_v8, %v557_v13  ;;  %v1295_v8 = vld [vmem:[%s2016_s3 + $0x60] sm:$0xff] }
 0x687   :  { %v749_v11 = vpack.c.bf16 %v1296_v10, %v1295_v8 }
 0x688   :  { %v575_v24 = vpack.c.bf16 %v569_v15, %v569_v15  ;;  %v642_v25 = vpack.c.bf16 %v571_v17, %v571_v17  ;;  %v496_v17 = vadd.f32 %v1708_v1, %v1750_v41 }
 0x68a   :  { %v692_v32 = vsel %vm160_vm2, %v642_v25, 0  ;;  %v625_v35 = vsel %vm160_vm2, %v575_v24, 0 }
 0x68b   :  { %634 = vmatpush.bf16.msrb.mxu0 %v625_v35  ;;  %701 = vmatpush.bf16.msra.mxu2 %v692_v32 }
 0x68d   :  { %v755_v56 = vpop.permute.xlu1 %754 }
 0x68e   :  { %1283 = vmatmul.msk.bf16.vlgmr.msrb.gmra.mxu0 %vm111_vm1, %v620_v36  ;;  %1285 = vmatmul.msk.bf16.vlgmr.msra.gmra.mxu2 %vm111_vm1, %v687_v37 }
 0x68f   :  { %763 = vmatpush.bf16.msra.mxu0 %v736_v20  ;;  %797 = vmatpush.bf16.msrb.mxu2 %v750_v9 }
 0x693   :  { %764 = vmatpush.bf16.msra.mxu0 %v735_v31  ;;  %798 = vmatpush.bf16.msrb.mxu2 %v749_v11 }
 0x69d   :  { %v783_v34 = vpop.f32.mrf.mxu1 }
 0x69e   :  { %1300 = vmatmul.msk.bf16.vlgmr.msra.gmra.mxu0 %vm60_vm0, %v1483_v14  ;;  %v1774_v33 = vadd.f32 %v783_v34, %v772_v18  ;;  %1302 = vmatmul.msk.bf16.vlgmr.msrb.gmra.mxu2 %vm60_vm0, %v1483_v14 }
 0x6a0   :  { %v806_v43 = vpack.c.bf16 %v1774_v33, %v1774_v33 }
 0x6a2   :  { %v812_v46 = vsel %vm111_vm1, %v806_v43, 0 }
 0x6a3   :  { %821 = vmatpush.bf16.xpose.msra.mxu3 %v812_v46 }
 0x6a5   :  { %v785_v40 = vpop.f32.mrf.mxu1 }
 0x6a6   :  { %v1776_v42 = vadd.f32 %v785_v40, %v772_v18 }
 0x6a8   :  { %v873_v44 = vpack.c.bf16 %v1776_v42, %v1776_v42 }
 0x6aa   :  { %v879_v49 = vsel %vm111_vm1, %v873_v44, 0 }
 0x6ab   :  { %888 = vmatpush.bf16.xpose.msra.mxu1 %v879_v49 }
 0x70b   :  { %v636_v50 = vpop.f32.mrf.mxu0 }
 0x711   :  { %v703_v47 = vpop.f32.mrf.mxu2 }
 0x712   :  { %v707_v51 = vpack.c.bf16 %v703_v47, %v636_v50 }
 0x713   :  { %v638_v52 = vpop.f32.mrf.mxu0 }
 0x714   :  { %1286 = vmatmul.msk.bf16.vlgmr.msrb.gmra.mxu3 %vm111_vm1, %v707_v51 }
 0x719   :  { %v705_v54 = vpop.f32.mrf.mxu2 }
 0x71b   :  { %v766_v58 = vpop.f32.mrf.mxu0 }
 0x71c   :  { %v1785_v60 = vadd.f32 %v766_v58, %v755_v56 }
 0x71e   :  { %v805_v63 = vpack.c.bf16 %v1785_v60, %v1785_v60 }
 0x721   :  { %v800_v46 = vpop.f32.mrf.mxu2 }
 0x723   :  { %v768_v3 = vpop.f32.mrf.mxu0 }
 0x724   :  { %v1789_v4 = vadd.f32 %v768_v3, %v755_v56  ;;  %1303 = vmatmul.msk.bf16.vlgmr.msra.gmra.mxu3 %vm111_vm1, %v805_v63 }
 0x726   :  { %v872_v5 = vpack.c.bf16 %v1789_v4, %v1789_v4 }
 0x728   :  { %1305 = vmatmul.msk.bf16.vlgmr.msra.gmra.mxu1 %vm111_vm1, %v872_v5 }
 0x729   :  { %v802_v11 = vpop.f32.mrf.mxu2 }
 0x797   :  { %v723_v13 = vpop.f32.mrf.mxu3 }
 0x798   :  { %v1809_v15 = vadd.f32 %v723_v13, %v494_v12 }
 0x79f   :  { %v725_v20 = vpop.f32.mrf.mxu3 }
 0x7a0   :  { %v1815_v21 = vadd.f32 %v725_v20, %v496_v17 }
 0x7a5   :  { %v890_v23 = vpop.f32.mrf.mxu1 }
 0x7a6   :  { %v894_v24 = vmul.f32 0.35355338, %v890_v23 }
 0x7a7   :  { %v823_v25 = vpop.f32.mrf.mxu3 }
 0x7a8   :  { %v827_v27 = vmul.f32 0.35355338, %v823_v25  ;;  %v895_v28 = vsel %vm111_vm1, %v894_v24, -inf }
 0x7a9   :  { %896 = vmax.xlane.f32.xlu0 %v895_v28 }
 0x7aa   :  { %v828_v0 = vsel %vm111_vm1, %v827_v27, -inf }
 0x7ab   :  { %829 = vmax.xlane.f32.xlu1 %v828_v0 }
 0x7ad   :  { %v892_v38 = vpop.f32.mrf.mxu1 }
 0x7af   :  { %v825_v32 = vpop.f32.mrf.mxu3 }
 0x7b0   :  { %v1299_v32 = vld [vmem:[%s2017_s4 + $0x18] sm:$0xff] }
 0x81c   :  { %v897_v35 = vpop.xlane.xlu0 %896 }
 0x81d   :  { %v898_v14 = vsub.f32 %v894_v24, %v897_v35  ;;  %v753_v35 = vpack.c.bf16 %v1299_v32, %v1299_v32 }
 0x81e   :  { %v830_v36 = vpop.xlane.xlu1 %829 }
 0x81f   :  { %v899_v37 = vmul.f32 1.442695, %v898_v14  ;;  %v831_v1 = vsub.f32 %v827_v27, %v830_v36  ;;  %v944_v14 = vsel %vm160_vm2, %v753_v35, 0 }
 0x820   :  { %953 = vmatpush.bf16.msrb.mxu3 %v944_v14  ;;  %v1127_v14 = vld [vmem:[%s2019_s6 + $0x68] sm:$0xff] }
 0x821   :  { %1342 = vpow2.f32 %v899_v37  ;;  %v832_v41 = vmul.f32 1.442695, %v831_v1 }
 0x823   :  { %1344 = vpow2.f32 %v832_v41 }
 0x827   :  { %v1343_v31 = vpop.eup %1342 }
 0x828   :  { %v901_v34 = vsel %vm111_vm1, %v1343_v31, 0.0 }
 0x829   :  { %v1345_v29 = vpop.eup %1344  ;;  %902 = vadd.xlane.f32.xlu0 %v901_v34  ;;  %v1835_v34 = vld [vmem:[%s2020_s7] sm:$0xff] }
 0x82a   :  { %v834_v39 = vsel %vm111_vm1, %v1345_v29, 0.0 }
 0x82b   :  { %835 = vadd.xlane.f32.xlu2 %v834_v39 }
 0x83d   :  { %788 = vrot.lane.b32.xlu0 %v1546_v57, %s1391_s18 }
 0x89c   :  { %v903_v16 = vpop.xlane.xlu0 %902 }
 0x89d   :  { %1346 = vrcp.f32 %v903_v16  ;;  %vm909_vm15 = vweird.f32 %v903_v16  ;;  %v913_v52 = vand.u32 2147483647, %v903_v16  ;;  %v915_v54 = vand.u32 2147483648, %v903_v16 }
 0x89e   :  { %v836_v18 = vpop.xlane.xlu2 %835 }
 0x89f   :  { %1348 = vrcp.f32 %v836_v18  ;;  %v848_v56 = vand.u32 2147483648, %v836_v18  ;;  %v846_v57 = vand.u32 2147483647, %v836_v18  ;;  %vm842_vm5 = vweird.f32 %v836_v18 }
 0x8a0   :  { %v916_v6 = vor.u32 1.1754944e-38, %v915_v54  ;;  %vm914_vm7 = vcmp.eq.f32.partialorder %v913_v52, 8.507059e+37 }
 0x8a1   :  { %v849_v7 = vor.u32 1.1754944e-38, %v848_v56  ;;  %vm847_vm8 = vcmp.eq.f32.partialorder %v846_v57, 8.507059e+37 }
 0x8a3   :  { %v1347_v40 = vpop.eup %1346 }
 0x8a4   :  { %v905_v43 = vmul.f32 %v1347_v40, %v903_v16  ;;  %vm910_vm14 = vweird.f32 %v1347_v40 }
 0x8a5   :  { %v1349_v44 = vpop.eup %1348  ;;  %vm911_vm4 = vmor %vm909_vm15, %vm910_vm14  ;;  %vm994_vm15 = vcmask 195584  }
 0x8a6   :  { %v906_v49 = vsub.f32 1.0, %v905_v43  ;;  %v838_v50 = vmul.f32 %v1349_v44, %v836_v18  ;;  %vm843_vm3 = vweird.f32 %v1349_v44 }
 0x8a7   :  { %vm844_vm6 = vmor %vm842_vm5, %vm843_vm3  ;;  %vm991_vm3 = vcmask 130048  }
 0x8a8   :  { %v907_v47 = vmul.f32 %v1347_v40, %v906_v49  ;;  %v839_v51 = vsub.f32 1.0, %v838_v50 }
 0x8aa   :  { %v908_v58 = vadd.f32 %v1347_v40, %v907_v47  ;;  %v840_v63 = vmul.f32 %v1349_v44, %v839_v51  ;;  %v1362_v47 = vld [vmem:[%s2013_s0 + $0x8] sm:$0xff] }
 0x8ac   :  { %v912_v3 = vsel %vm911_vm4, %v1347_v40, %v908_v58  ;;  %v841_v5 = vadd.f32 %v1349_v44, %v840_v63  ;;  %v1361_v40 = vld [vmem:[%s2013_s0] sm:$0xff] }
 0x8ad   :  { %v917_v9 = vsel %vm914_vm7, %v916_v6, %v912_v3 }
 0x8ae   :  { %v845_v8 = vsel %vm844_vm6, %v1349_v44, %v841_v5  ;;  %v918_v20 = vmul.f32 %v1343_v31, %v917_v9 }
 0x8af   :  { %v850_v10 = vsel %vm847_vm8, %v849_v7, %v845_v8  ;;  %v789_v12 = vpop.permute.xlu0 %788 }
 0x8b0   :  { %v801_v13 = vadd.f32 %v800_v46, %v789_v12  ;;  %v803_v17 = vadd.f32 %v802_v11, %v789_v12  ;;  %v851_v23 = vmul.f32 %v1345_v29, %v850_v10  ;;  %v919_v38 = vpack.c.bf16 %v918_v20, %v918_v20  ;;  %v1089_v10 = vld [vmem:[%s2018_s5 + $0x10] sm:$0xff]  ;;  %v1090_v11 = vld [vmem:[%s2018_s5 + $0x18] sm:$0xff] }
 0x8b1   :  { %v962_v29 = vperm.slane %v1835_v34, 3  ;;  %v1092_v12 = vpack.c.bf16 %v1090_v11, %v1089_v10 }
 0x8b2   :  { %v807_v24 = vpack.c.bf16 %v801_v13, %v801_v13  ;;  %v874_v25 = vpack.c.bf16 %v803_v17, %v803_v17  ;;  %v852_v0 = vpack.c.bf16 %v851_v23, %v851_v23 }
 0x8b4   :  { %v857_v27 = vsel %vm160_vm2, %v807_v24, 0  ;;  %v924_v28 = vsel %vm160_vm2, %v874_v25, 0 }
 0x8b5   :  { %866 = vmatpush.bf16.msrb.mxu0 %v857_v27  ;;  %933 = vmatpush.bf16.msra.mxu2 %v924_v28  ;;  %v1128_v28 = vld [vmem:[%s2019_s6 + $0x70] sm:$0xff] }
 0x8b8   :  { %1304 = vmatmul.msk.bf16.vlgmr.msrb.gmra.mxu0 %vm111_vm1, %v852_v0  ;;  %1306 = vmatmul.msk.bf16.vlgmr.msra.gmra.mxu2 %vm111_vm1, %v919_v38  ;;  %v1129_v0 = vld [vmem:[%s2019_s6 + $0x78] sm:$0xff]  ;;  %v1126_v38 = vld [vmem:[%s2019_s6 + $0x60] sm:$0xff] }
 0x8b9   :  { %1103 = vmatpush.bf16.msra.mxu0 %v1092_v12  ;;  %v1137_v35 = vpack.c.bf16 %v1129_v0, %v1128_v28 }
 0x8bb   :  { %1139 = vmatpush.bf16.msrb.mxu1 %v1137_v35 }
 0x935   :  { %v868_v36 = vpop.f32.mrf.mxu0 }
 0x93b   :  { %v935_v37 = vpop.f32.mrf.mxu2 }
 0x93c   :  { %v939_v1 = vpack.c.bf16 %v935_v37, %v868_v36  ;;  %v1136_v37 = vpack.c.bf16 %v1127_v14, %v1126_v38 }
 0x93d   :  { %v870_v41 = vpop.f32.mrf.mxu0 }
 0x93e   :  { %1307 = vmatmul.msk.bf16.vlgmr.msrb.gmra.mxu3 %vm111_vm1, %v939_v1  ;;  %v1124_v1 = vld [vmem:[%s2019_s6 + $0x50] sm:$0xff]  ;;  %v1125_v41 = vld [vmem:[%s2019_s6 + $0x58] sm:$0xff]  ;;  %1140 = vmatpush.bf16.msrb.mxu1 %v1136_v37 }
 0x943   :  { %v937_v31 = vpop.f32.mrf.mxu2 }
 0x9c1   :  { %v955_v39 = vpop.f32.mrf.mxu3 }
 0x9c2   :  { %v960_v16 = vadd.f32 %v955_v39, %v1809_v15  ;;  %v1135_v39 = vpack.c.bf16 %v1125_v41, %v1124_v1 }
 0x9c4   :  { %v963_v18 = vadd.f32 %v962_v29, %v960_v16  ;;  %1141 = vmatpush.bf16.msrb.mxu1 %v1135_v39 }
 0x9c6   :  { %v1027_v43 = vadd.f32 %v1361_v40, %v963_v18  ;;  %v1122_v18 = vld [vmem:[%s2019_s6 + $0x40] sm:$0xff]  ;;  %v1123_v40 = vld [vmem:[%s2019_s6 + $0x48] sm:$0xff] }
 0x9c8   :  { %v1029_v44 = vsel %vm60_vm0, %v1027_v43, 0.0 }
 0x9c9   :  { %1030 = vadd.xlane.f32.xlu0 %v1029_v44  ;;  %v957_v46 = vpop.f32.mrf.mxu3 }
 0x9ca   :  { %v961_v49 = vadd.f32 %v957_v46, %v1815_v21  ;;  %v1395_v21 = vmov 32.0  }
 0x9cb   :  { %1350 = vrcp.f32 %v1395_v21  ;;  %v1080_v21 = vperm.slane %v1835_v34, 4 }
 0x9cc   :  { %v964_v50 = vadd.f32 %v962_v29, %v961_v49 }
 0x9ce   :  { %v1028_v51 = vadd.f32 %v1362_v47, %v964_v50  ;;  %v1134_v50 = vpack.c.bf16 %v1123_v40, %v1122_v18 }
 0x9d0   :  { %v1032_v15 = vsel %vm60_vm0, %v1028_v51, 0.0  ;;  %1142 = vmatpush.bf16.msrb.mxu1 %v1134_v50 }
 0x9d1   :  { %1033 = vadd.xlane.f32.xlu1 %v1032_v15  ;;  %v1351_v52 = vpop.eup %1350 }
 0x9d2   :  { %v1036_v54 = vmul.f32 32.0, %v1351_v52  ;;  %vm1040_vm2 = vweird.f32 %v1351_v52 }
 0x9d4   :  { %v1037_v56 = vsub.f32 1.0, %v1036_v54 }
 0x9d6   :  { %v1038_v58 = vmul.f32 %v1351_v52, %v1037_v56 }
 0x9d8   :  { %v1039_v63 = vadd.f32 %v1351_v52, %v1038_v58 }
 0x9dd   :  { %969 = vrot.lane.b32.xlu0 %v1606_v2, %s1392_s27  ;;  %v1856_v2 = vsel %vm1040_vm2, %v1351_v52, %v1039_v63  ;;  %v1083_v63 = vperm.slane %v1835_v34, 5 }
 0x9e5   :  { %1001 = vrot.lane.b32.xlu0 %v1600_v62, %s1392_s27 }
 0x9ed   :  { %1007 = vrot.lane.b32.xlu0 %v1685_v45, %s1393_s29 }
 0x9f5   :  { %985 = vrot.lane.b32.xlu0 %v1789_v4, %s1394_s30 }
 0xa3c   :  { %v1031_v57 = vpop.xlane.xlu0 %1030 }
 0xa3d   :  { %v1042_v62 = vmul.f32 %v1856_v2, %v1031_v57 }
 0xa3f   :  { %v1859_v3 = vsub.f32 %v1027_v43, %v1042_v62 }
 0xa41   :  { %v1046_v45 = vmul.f32 %v1859_v3, %v1859_v3 }
 0xa43   :  { %v1048_v4 = vsel %vm60_vm0, %v1046_v45, 0.0 }
 0xa44   :  { %1049 = vadd.xlane.f32.xlu2 %v1048_v4  ;;  %v1034_v5 = vpop.xlane.xlu1 %1033 }
 0xa45   :  { %v1043_v6 = vmul.f32 %v1856_v2, %v1034_v5 }
 0xa47   :  { %v1865_v7 = vsub.f32 %v1028_v51, %v1043_v6 }
 0xa49   :  { %v1047_v8 = vmul.f32 %v1865_v7, %v1865_v7 }
 0xa4b   :  { %v1051_v9 = vsel %vm60_vm0, %v1047_v8, 0.0 }
 0xa4c   :  { %1052 = vadd.xlane.f32.xlu1 %v1051_v9 }
 0xa4f   :  { %v970_v25 = vpop.permute.xlu0 %969 }
 0xa57   :  { %v1916_v46 = vpop.permute.xlu0 %1001 }
 0xa5c   :  { %967 = vrot.lane.b32.xlu2 %v1596_v59, %s1392_s27 }
 0xa5f   :  { %v1920_v58 = vpop.permute.xlu0 %1007 }
 0xa64   :  { %975 = vrot.lane.b32.xlu2 %v1691_v48, %s1393_s29  ;;  %v1088_v48 = vld [vmem:[%s2018_s5 + $0x8] sm:$0xff] }
 0xa65   :  { %999 = vrot.lane.b32.xlu1 %v1591_v53, %s1392_s27  ;;  %v1087_v53 = vld [vmem:[%s2018_s5] sm:$0xff] }
 0xa66   :  { %v1091_v17 = vpack.c.bf16 %v1088_v48, %v1087_v53  ;;  %v1119_v53 = vld [vmem:[%s2019_s6 + $0x28] sm:$0xff] }
 0xa67   :  { %v986_v10 = vpop.permute.xlu0 %985 }
 0xa68   :  { %1104 = vmatpush.bf16.msra.mxu0 %v1091_v17  ;;  %v1117_v17 = vld [vmem:[%s2019_s6 + $0x18] sm:$0xff] }
 0xa6d   :  { %977 = vrot.lane.b32.xlu1 %v1701_v61, %s1393_s29 }
 0xab7   :  { %v1050_v13 = vpop.xlane.xlu2 %1049 }
 0xab8   :  { %v1054_v59 = vmul.f32 %v1050_v13, %v1856_v2 }
 0xaba   :  { %v1056_v61 = vadd.f32 1e-05, %v1054_v59  ;;  %v1118_v59 = vld [vmem:[%s2019_s6 + $0x20] sm:$0xff] }
 0xabb   :  { %v1132_v48 = vpack.c.bf16 %v1119_v53, %v1118_v59 }
 0xabc   :  { %1352 = vrsqrt.f32 %v1056_v61  ;;  %vm1064_vm10 = vweird.f32 %v1056_v61 }
 0xabf   :  { %v1053_v20 = vpop.xlane.xlu1 %1052 }
 0xac0   :  { %v1055_v23 = vmul.f32 %v1053_v20, %v1856_v2 }
 0xac2   :  { %v1353_v24 = vpop.eup %1352  ;;  %v1057_v27 = vadd.f32 1e-05, %v1055_v23  ;;  %v1114_v23 = vld [vmem:[%s2019_s6] sm:$0xff] }
 0xac3   :  { %v1059_v32 = vmul.f32 %v1353_v24, %v1056_v61  ;;  %vm1065_vm9 = vweird.f32 %v1353_v24  ;;  %v1116_v61 = vld [vmem:[%s2019_s6 + $0x10] sm:$0xff] }
 0xac4   :  { %1354 = vrsqrt.f32 %v1057_v27  ;;  %vm1066_vm11 = vmor %vm1064_vm10, %vm1065_vm9  ;;  %vm1074_vm13 = vweird.f32 %v1057_v27  ;;  %v1131_v20 = vpack.c.bf16 %v1117_v17, %v1116_v61 }
 0xac5   :  { %v1060_v36 = vmul.f32 %v1353_v24, %v1059_v32 }
 0xac7   :  { %v1061_v31 = vmul.f32 0.5, %v1060_v36 }
 0xac9   :  { %v1062_v29 = vsub.f32 1.5, %v1061_v31 }
 0xaca   :  { %v1355_v16 = vpop.eup %1354 }
 0xacb   :  { %v1063_v43 = vmul.f32 %v1353_v24, %v1062_v29  ;;  %v1069_v44 = vmul.f32 %v1355_v16, %v1057_v27  ;;  %vm1075_vm12 = vweird.f32 %v1355_v16  ;;  %v38_v27 = vld [vmem:[%s2020_s7 + $0x8] sm:$0xff] }
 0xacc   :  { %vm1076_vm14 = vmor %vm1074_vm13, %vm1075_vm12  ;;  %v1093_v0 = vperm.slane %v38_v27, 1  ;;  %v1138_v1 = vperm.slane %v38_v27, 0 }
 0xacd   :  { %v1070_v49 = vmul.f32 %v1355_v16, %v1069_v44  ;;  %v1067_v47 = vsel %vm1066_vm11, %v1353_v24, %v1063_v43  ;;  %v1115_v24 = vld [vmem:[%s2019_s6 + $0x8] sm:$0xff]  ;;  %v968_v44 = vpop.permute.xlu2 %967 }
 0xace   :  { %v1078_v52 = vmul.f32 %v1067_v47, %v1859_v3  ;;  %v990_v3 = vsel %vm111_vm1, %v1515_v30, %v970_v25  ;;  %v1121_v30 = vld [vmem:[%s2019_s6 + $0x38] sm:$0xff]  ;;  %v1130_v25 = vpack.c.bf16 %v1115_v24, %v1114_v23 }
 0xacf   :  { %v1071_v51 = vmul.f32 0.5, %v1070_v49 }
 0xad0   :  { %v1081_v57 = vmul.f32 %v1080_v21, %v1078_v52 }
 0xad1   :  { %v1072_v15 = vsub.f32 1.5, %v1071_v51 }
 0xad2   :  { %v1084_v5 = vadd.f32 %v1083_v63, %v1081_v57 }
 0xad3   :  { %v1073_v54 = vmul.f32 %v1355_v16, %v1072_v15 }
 0xad5   :  { %v1077_v56 = vsel %vm1076_vm14, %v1355_v16, %v1073_v54  ;;  %v976_v49 = vpop.permute.xlu2 %975 }
 0xad6   :  { %v1079_v62 = vmul.f32 %v1077_v56, %v1865_v7  ;;  %v1120_v7 = vld [vmem:[%s2019_s6 + $0x30] sm:$0xff] }
 0xad7   :  { %v1924_v45 = vpop.permute.xlu1 %999  ;;  %v1133_v13 = vpack.c.bf16 %v1121_v30, %v1120_v7 }
 0xad8   :  { %v1082_v4 = vmul.f32 %v1080_v21, %v1079_v62 }
 0xad9   :  { %1143 = vmatpush.bf16.msrb.mxu1 %v1133_v13 }
 0xada   :  { %v1085_v6 = vadd.f32 %v1083_v63, %v1082_v4 }
 0xadc   :  { %v1086_v8 = vpack.c.bf16 %v1085_v6, %v1084_v5 }
 0xadd   :  { %1144 = vmatpush.bf16.msrb.mxu1 %v1132_v48  ;;  %v1199_v48 = vperm.slane %v1835_v34, 6 }
 0xade   :  { %1308 = vmatmul.msk.bf16.vlgmr.msra.gmra.mxu0 %vm60_vm0, %v1086_v8 }
 0xadf   :  { %v978_v9 = vpop.permute.xlu1 %977 }
 0xae0   :  { %v993_v11 = vsel %vm991_vm3, %v990_v3, %v978_v9 }
 0xae1   :  { %v996_v12 = vsel %vm994_vm15, %v993_v11, %v986_v10  ;;  %1145 = vmatpush.bf16.msrb.mxu1 %v1131_v20  ;;  %v1202_v20 = vperm.slane %v1835_v34, 7 }
 0xae2   :  { %1208 = vst.msk [vmem:[%s2022_s9 + $0x8] sm:$0xff] %vm60_vm0, %v996_v12 }
 0xae5   :  { %1146 = vmatpush.bf16.msrb.mxu1 %v1130_v25 }
 0xb5b   :  { %v1106_v28 = vpop.f32.mrf.mxu0 }
 0xb5c   :  { %v1107_v38 = vadd.f32 %v1106_v28, %v1093_v0 }
 0xb5e   :  { %v1111_v14 = vmax.f32 %v1107_v38, 0.0  ;;  %v1022_v38 = vsel %vm111_vm1, %v1508_v26, %v1916_v46 }
 0xb63   :  { %v1108_v32 = vpop.f32.mrf.mxu0 }
 0xb64   :  { %v1109_v35 = vadd.f32 %v1108_v32, %v1093_v0 }
 0xb66   :  { %v1112_v36 = vmax.f32 %v1109_v35, 0.0 }
 0xb68   :  { %v1113_v37 = vpack.c.bf16 %v1112_v36, %v1111_v14 }
 0xb6a   :  { %1147 = vmatmul.bf16.vlgmr.msrb.gmra.mxu1 %v1113_v37 }
 0xbe7   :  { %v1148_v41 = vpop.f32.mrf.mxu1 }
 0xbe8   :  { %v1149_v31 = vadd.f32 %v1148_v41, %v1138_v1 }
 0xbea   :  { %v1153_v29 = vadd.f32 %v1149_v31, %v1084_v5 }
 0xbec   :  { %v1155_v39 = vsel %vm60_vm0, %v1153_v29, 0.0 }
 0xbed   :  { %1156 = vadd.xlane.f32.xlu2 %v1155_v39 }
 0xbef   :  { %v1150_v16 = vpop.f32.mrf.mxu1 }
 0xbf0   :  { %v1151_v18 = vadd.f32 %v1150_v16, %v1138_v1 }
 0xbf2   :  { %v1154_v40 = vadd.f32 %v1151_v18, %v1085_v6 }
 0xbf4   :  { %v1158_v43 = vsel %vm60_vm0, %v1154_v40, 0.0 }
 0xbf5   :  { %1159 = vadd.xlane.f32.xlu1 %v1158_v43 }
 0xc05   :  { %1009 = vrot.lane.b32.xlu2 %v1695_v55, %s1393_s29 }
 0xc0e   :  { %983 = vrot.lane.b32.xlu1 %v1785_v60, %s1394_s30  ;;  %v989_v60 = vsel %vm111_vm1, %v1502_v22, %v968_v44 }
 0xc0f   :  { %v992_v57 = vsel %vm991_vm3, %v989_v60, %v976_v49 }
 0xc60   :  { %v1157_v50 = vpop.xlane.xlu2 %1156 }
 0xc61   :  { %v1161_v47 = vmul.f32 %v1157_v50, %v1856_v2 }
 0xc63   :  { %v1163_v51 = vsub.f32 %v1153_v29, %v1161_v47 }
 0xc65   :  { %v1165_v15 = vmul.f32 %v1163_v51, %v1163_v51 }
 0xc67   :  { %v1167_v21 = vsel %vm60_vm0, %v1165_v15, 0.0 }
 0xc68   :  { %1168 = vadd.xlane.f32.xlu2 %v1167_v21  ;;  %v1160_v52 = vpop.xlane.xlu1 %1159  ;;  %v1010_v5 = vpop.permute.xlu2 %1009 }
 0xc69   :  { %v1162_v54 = vmul.f32 %v1160_v52, %v1856_v2  ;;  %v1024_v34 = vsel %vm991_vm3, %v1022_v38, %v1010_v5 }
 0xc6b   :  { %v1164_v56 = vsub.f32 %v1154_v40, %v1162_v54 }
 0xc6d   :  { %v1166_v63 = vmul.f32 %v1164_v56, %v1164_v56 }
 0xc6f   :  { %v1170_v55 = vsel %vm60_vm0, %v1166_v63, 0.0 }
 0xc70   :  { %1171 = vadd.xlane.f32.xlu1 %v1170_v55 }
 0xc80   :  { %1015 = vrot.lane.b32.xlu2 %v1774_v33, %s1394_s30  ;;  %v984_v62 = vpop.permute.xlu1 %983  ;;  %v1021_v33 = vsel %vm111_vm1, %v1497_v19, %v1924_v45 }
 0xc81   :  { %v995_v4 = vsel %vm994_vm15, %v992_v57, %v984_v62  ;;  %v1023_v9 = vsel %vm991_vm3, %v1021_v33, %v1920_v58 }
 0xc82   :  { %1207 = vst.msk [vmem:[%s2022_s9] sm:$0xff] %vm60_vm0, %v995_v4 }
 0xc89   :  { %1017 = vrot.lane.b32.xlu1 %v1776_v42, %s1394_s30  ;;  %s1396_s30 = smov [#allocation2]  }
 0xc8a   :  { %s1215_s2 = sshll.u32 %s1396_s30, 4  ;;  %s1216_s2 = int_to_ptr.vmem [resolvable:$true] %s1215_s2 }
 0xcdb   :  { %v1169_v6 = vpop.xlane.xlu2 %1168 }
 0xcdc   :  { %v1173_v22 = vmul.f32 %v1169_v6, %v1856_v2 }
 0xcde   :  { %v1175_v8 = vadd.f32 1e-05, %v1173_v22 }
 0xce0   :  { %1356 = vrsqrt.f32 %v1175_v8  ;;  %vm1183_vm5 = vweird.f32 %v1175_v8 }
 0xce3   :  { %v1016_v3 = vpop.permute.xlu2 %1015  ;;  %v1172_v10 = vpop.xlane.xlu1 %1171 }
 0xce4   :  { %v1025_v11 = vsel %vm994_vm15, %v1023_v9, %v1016_v3  ;;  %v1174_v12 = vmul.f32 %v1172_v10, %v1856_v2 }
 0xce5   :  { %1209 = vst.msk [vmem:[%s2023_s10] sm:$0xff] %vm60_vm0, %v1025_v11 }
 0xce6   :  { %v1357_v42 = vpop.eup %1356  ;;  %v1176_v7 = vadd.f32 1e-05, %v1174_v12 }
 0xce7   :  { %v1178_v30 = vmul.f32 %v1357_v42, %v1175_v8  ;;  %vm1184_vm4 = vweird.f32 %v1357_v42 }
 0xce8   :  { %1358 = vrsqrt.f32 %v1176_v7  ;;  %vm1185_vm6 = vmor %vm1183_vm5, %vm1184_vm4  ;;  %vm1193_vm8 = vweird.f32 %v1176_v7 }
 0xce9   :  { %v1179_v19 = vmul.f32 %v1357_v42, %v1178_v30 }
 0xceb   :  { %v1180_v45 = vmul.f32 0.5, %v1179_v19 }
 0xced   :  { %v1181_v13 = vsub.f32 1.5, %v1180_v45 }
 0xcee   :  { %v1359_v59 = vpop.eup %1358 }
 0xcef   :  { %v1182_v58 = vmul.f32 %v1357_v42, %v1181_v13  ;;  %v1188_v53 = vmul.f32 %v1359_v59, %v1176_v7  ;;  %vm1194_vm7 = vweird.f32 %v1359_v59 }
 0xcf0   :  { %vm1195_vm2 = vmor %vm1193_vm8, %vm1194_vm7 }
 0xcf1   :  { %v1186_v2 = vsel %vm1185_vm6, %v1357_v42, %v1182_v58  ;;  %v1189_v61 = vmul.f32 %v1359_v59, %v1188_v53 }
 0xcf2   :  { %v1197_v17 = vmul.f32 %v1186_v2, %v1163_v51 }
 0xcf3   :  { %v1190_v23 = vmul.f32 0.5, %v1189_v61 }
 0xcf4   :  { %v1200_v24 = vmul.f32 %v1199_v48, %v1197_v17 }
 0xcf5   :  { %v1191_v25 = vsub.f32 1.5, %v1190_v23 }
 0xcf6   :  { %v1203_v27 = vadd.f32 %v1202_v20, %v1200_v24 }
 0xcf7   :  { %v1192_v28 = vmul.f32 %v1359_v59, %v1191_v25 }
 0xcf8   :  { %1205 = vst.msk [vmem:[#allocation2] sm:$0xff] %vm60_vm0, %v1203_v27 }
 0xcf9   :  { %v1196_v0 = vsel %vm1195_vm2, %v1359_v59, %v1192_v28 }
 0xcfa   :  { %v1198_v32 = vmul.f32 %v1196_v0, %v1164_v56 }
 0xcfb   :  { %v1018_v35 = vpop.permute.xlu1 %1017 }
 0xcfc   :  { %v1201_v14 = vmul.f32 %v1199_v48, %v1198_v32  ;;  %v1026_v36 = vsel %vm994_vm15, %v1024_v34, %v1018_v35 }
 0xcfd   :  { %1210 = vst.msk [vmem:[%s2023_s10 + $0x8] sm:$0xff] %vm60_vm0, %v1026_v36 }
 0xcfe   :  { %v1204_v26 = vadd.f32 %v1202_v20, %v1201_v14 }
 0xd00   :  { %1206 = vst.msk [vmem:[#allocation2 + $0x8] sm:$0xff] %vm60_vm0, %v1204_v26 }
 0xd01   :  { %1223 = dma.vmem_to_hbm [thread:$0]  %s1216_s2, 256, %s1218_s11, [#allocation3], %s1397_s1, %s1397_s1, %s1392_s27  }
 0xd02   :  { %1387 = dma.done.wait [#allocation3], 256  }
 0xd03   :  { %1388 = vsyncadd [#allocation3], 4294967040 }
 0xd04   :  { %1236 = vsyncpa [#allocation3], 1 }

</bundles_post_ra>
